<compile_context>
chip_gen: v7x
topology: tpu7x:2x2x1
jax: 0.10.0
libtpu: 0.0.40
codegen_flags: <defaults>
</compile_context>

<pallas_src>
import math
from dataclasses import dataclass

import jax
import jax.numpy as jnp
import numpy as np
from jax.experimental import pallas as pl
from jax.experimental.pallas import tpu as pltpu


@dataclass
class Params:
    input_size: int = 16
    hidden_size: int = 32
    num_layers: int = 2
    output_size: int = 8
    dr: float = 0.1


# ----------------------------- Pallas kernel --------------------------------

def make_grunet_kernel(S, Bp, I, H, O, L, w_offs, b_offs, fc_w_off, fc_b_off):
    """Fused kernel: L stacked GRU layers over S steps + Linear head.

    Operands:
      x_ref   (S*Bp, I)            time-major, batch padded to Bp
      w_ref   (R, 3H)              weight slab: [wih_l; whh_l]*L ; wfc (lane-padded)
      b_ref   (16L+8, 3H)          bias slab (8-row padded entries):
                                   per layer: gx-bias row [b_ir+b_hr | b_iz+b_hz | b_in],
                                              hn-bias row [0 | 0 | b_hn]; then fc bias.
      out_ref (Bp, O)
    Scratch:
      gxs_ref  (S*Bp, 3H)  VMEM    hoisted input projections of the current layer
      hseq_ref (S*Bp, H)   VMEM    per-step hidden states (feeds next layer's hoist)
    """
    TH = 3 * H

    def kernel(x_ref, w_ref, b_ref, out_ref, gxs_ref, hseq_ref):
        # ---- layer 0: hoisted input projection (one bulk lane-dense matmul) --
        wih0 = w_ref[w_offs[0][0]:w_offs[0][0] + I, :]            # (I, 3H)
        bx0 = b_ref[b_offs[0][0]:b_offs[0][0] + 1, :]             # (1, 3H)
        gxs_ref[...] = (
            jnp.dot(x_ref[...], wih0, preferred_element_type=jnp.float32) + bx0)

        h = None
        for l in range(L):
            whh = w_ref[w_offs[l][1]:w_offs[l][1] + H, :]         # (H, 3H)
            # Hoisted bias broadcast: [0 | 0 | b_hn] over (Bp, 3H), once per layer.
            bhn_b = jnp.broadcast_to(
                b_ref[b_offs[l][1]:b_offs[l][1] + 1, :], (Bp, TH))

            has_next = l + 1 < L
            h = jnp.zeros((Bp, H), jnp.float32)

            # ---- time recurrence: only h @ W_hh stays on the serial path ----
            for t in range(S):
                gx = gxs_ref[t * Bp:(t + 1) * Bp, :]              # (Bp, 3H), 8-aligned
                gh = jnp.dot(h, whh,
                             preferred_element_type=jnp.float32) + bhn_b
                rz = jax.nn.sigmoid(gx[:, :2 * H] + gh[:, :2 * H])
                r = rz[:, :H]
                z = rz[:, H:]
                # b_hn already folded into gh's n lanes (inside the r * (.)).
                n = jnp.tanh(gx[:, 2 * H:] + r * gh[:, 2 * H:])
                h = (1.0 - z) * n + z * h
                if has_next:
                    hseq_ref[t * Bp:(t + 1) * Bp, :] = h          # off the serial chain

            # ---- hoisted projection of this layer's outputs for layer l+1 ---
            if has_next:
                wnx = w_ref[w_offs[l + 1][0]:w_offs[l + 1][0] + H, :]   # (H, 3H)
                bnx = b_ref[b_offs[l + 1][0]:b_offs[l + 1][0] + 1, :]   # (1, 3H)
                gxs_ref[...] = (
                    jnp.dot(hseq_ref[...], wnx,
                            preferred_element_type=jnp.float32) + bnx)

        # ---- fused FC head on the last layer's final hidden state ------------
        wfc = w_ref[fc_w_off:fc_w_off + H, :]                     # (H, 3H), zero-padded
        bfc = b_ref[fc_b_off:fc_b_off + 1, :]                     # (1, 3H), zero-padded
        fc = jnp.dot(h, wfc, preferred_element_type=jnp.float32) + bfc
        out_ref[...] = fc[:, :O].astype(out_ref.dtype)

    return kernel


# ------------------------------ wrappers -------------------------------------

def grunet_forward(x, layers_raw, w_fc, b_fc):
    """Fused GRUNet forward.

    x:          (S, B, input_size)            -- batch_first=False layout.
    layers_raw: list of PyTorch-layout params per layer:
                (w_ih (3H, in), w_hh (3H, H), b_ih (3H,), b_hh (3H,)),
                gate order (r, z, n).
    w_fc:       (O, H), b_fc: (O,)
    returns:    (B, O)
    """
    S, B, I = x.shape
    H = layers_raw[0][1].shape[1]
    O = w_fc.shape[0]
    L = len(layers_raw)
    TH = 3 * H
    assert O <= TH, "FC output wider than 3H not supported by the slab packing"

    # Pad batch to the sublane multiple (8): every t*Bp row offset is aligned.
    Bp = ((max(B, 8) + 7) // 8) * 8

    # ---- host-side packing (layout plumbing only) ----------------------------
    w_parts, b_parts = [], []
    w_offs, b_offs = [], []
    wr = 0
    for l, (w_ih, w_hh, b_ih, b_hh) in enumerate(layers_raw):
        in_dim = w_ih.shape[1]
        w_parts.append(w_ih.T.astype(jnp.float32))               # (in, 3H) lanes r|z|n
        w_parts.append(w_hh.T.astype(jnp.float32))               # (H, 3H)
        w_offs.append((wr, wr + in_dim))
        wr += in_dim + H

        gx_bias = jnp.concatenate(
            [b_ih[:2 * H] + b_hh[:2 * H], b_ih[2 * H:]]).reshape(1, TH)
        hn_bias = jnp.concatenate(
            [jnp.zeros((2 * H,), jnp.float32), b_hh[2 * H:]]).reshape(1, TH)
        b_parts.append(jnp.pad(gx_bias, ((0, 7), (0, 0))))       # 8-row padded entry
        b_parts.append(jnp.pad(hn_bias, ((0, 7), (0, 0))))
        b_offs.append((16 * l, 16 * l + 8))

    fc_w_off = wr
    w_parts.append(jnp.pad(w_fc.T.astype(jnp.float32),
                           ((0, 0), (0, TH - O))))                # (H, 3H)
    wr += H
    fc_b_off = 16 * L
    b_parts.append(jnp.pad(b_fc.reshape(1, O).astype(jnp.float32),
                           ((0, 7), (0, TH - O))))

    w_slab = jnp.concatenate(w_parts, axis=0)                     # (wr, 3H)
    b_slab = jnp.concatenate(b_parts, axis=0)                     # (16L+8, 3H)

    x_p = jnp.pad(x.astype(jnp.float32), ((0, 0), (0, Bp - B), (0, 0)))
    x2d = x_p.reshape(S * Bp, I)

    kernel = make_grunet_kernel(S, Bp, I, H, O, L, w_offs, b_offs,
                                fc_w_off, fc_b_off)
    out = pl.pallas_call(
        kernel,
        out_shape=jax.ShapeDtypeStruct((Bp, O), jnp.float32),
        scratch_shapes=[pltpu.VMEM((S * Bp, TH), jnp.float32),
                        pltpu.VMEM((S * Bp, H), jnp.float32)],
    )(x2d, w_slab, b_slab)
    return out[:B]


# -------------------------- reference (plain JAX) ----------------------------

def grunet_ref(x, layers_raw, w_fc, b_fc):
    """Pure-JAX reference consuming the RAW PyTorch-layout weights."""
    S, B, _ = x.shape
    h_seq = x
    for (w_ih, w_hh, b_ih, b_hh) in layers_raw:
        H = w_hh.shape[1]

        def step(h, x_t, w_ih=w_ih, w_hh=w_hh, b_ih=b_ih, b_hh=b_hh, H=H):
            gi = x_t @ w_ih.T + b_ih                 # (B, 3H)
            gh = h @ w_hh.T + b_hh                   # (B, 3H)
            r = jax.nn.sigmoid(gi[:, :H] + gh[:, :H])
            z = jax.nn.sigmoid(gi[:, H:2 * H] + gh[:, H:2 * H])
            n = jnp.tanh(gi[:, 2 * H:] + r * gh[:, 2 * H:])
            h_new = (1.0 - z) * n + z * h
            return h_new, h_new

        _, h_seq = jax.lax.scan(step, jnp.zeros((B, H), jnp.float32), h_seq)
    return h_seq[-1] @ w_fc.T + b_fc


# --------------------------------- main --------------------------------------

if __name__ == "__main__":
    p = Params()
    seq_len, batch = 8, 4

    key = jax.random.PRNGKey(0)
    k_x, key = jax.random.split(key)
    x = jax.random.normal(k_x, (seq_len, batch, p.input_size), dtype=jnp.float32)

    # Deterministic PyTorch-style init: U(-1/sqrt(H), 1/sqrt(H)), raw layout.
    bound = 1.0 / math.sqrt(p.hidden_size)
    layers_raw = []
    for layer in range(p.num_layers):
        in_dim = p.input_size if layer == 0 else p.hidden_size
        k1, k2, k3, k4, key = jax.random.split(key, 5)
        w_ih = jax.random.uniform(k1, (3 * p.hidden_size, in_dim),
                                  minval=-bound, maxval=bound, dtype=jnp.float32)
        w_hh = jax.random.uniform(k2, (3 * p.hidden_size, p.hidden_size),
                                  minval=-bound, maxval=bound, dtype=jnp.float32)
        b_ih = jax.random.uniform(k3, (3 * p.hidden_size,),
                                  minval=-bound, maxval=bound, dtype=jnp.float32)
        b_hh = jax.random.uniform(k4, (3 * p.hidden_size,),
                                  minval=-bound, maxval=bound, dtype=jnp.float32)
        layers_raw.append((w_ih, w_hh, b_ih, b_hh))

    k5, k6, key = jax.random.split(key, 3)
    w_fc = jax.random.uniform(k5, (p.output_size, p.hidden_size),
                              minval=-bound, maxval=bound, dtype=jnp.float32)
    b_fc = jax.random.uniform(k6, (p.output_size,),
                              minval=-bound, maxval=bound, dtype=jnp.float32)

    out = grunet_forward(x, layers_raw, w_fc, b_fc)
    out = jax.block_until_ready(out)

    ref = grunet_ref(x, layers_raw, w_fc, b_fc)
    np.testing.assert_allclose(np.asarray(out), np.asarray(ref),
                               rtol=2e-5, atol=2e-5)
    assert out.shape == (batch, p.output_size)
    print("KERNEL_OK")
</pallas_src>

<mosaic_0001>
module attributes {stable_mosaic.version = 11 : i64} {
  func.func @kernel(%arg0: memref<64x16xf32, #tpu.memory_space<vmem>>, %arg1: memref<144x96xf32, #tpu.memory_space<vmem>>, %arg2: memref<40x96xf32, #tpu.memory_space<vmem>>, %arg3: memref<8x8xf32, #tpu.memory_space<vmem>>, %arg4: memref<64x96xf32, #tpu.memory_space<vmem>>, %arg5: memref<64x32xf32, #tpu.memory_space<vmem>>) attributes {dimension_semantics = [], scalar_prefetch = 0 : i64, scratch_operands = 2 : i64, tpu.core_type = #tpu.core_type<tc>} {
    %c0 = arith.constant 0 : index
    %c0_0 = arith.constant 0 : index
    %0 = vector.load %arg1[%c0, %c0_0] : memref<144x96xf32, #tpu.memory_space<vmem>>, vector<16x96xf32>
    %c0_1 = arith.constant 0 : index
    %c0_2 = arith.constant 0 : index
    %1 = vector.load %arg2[%c0_1, %c0_2] : memref<40x96xf32, #tpu.memory_space<vmem>>, vector<1x96xf32>
    %c0_3 = arith.constant 0 : index
    %c0_4 = arith.constant 0 : index
    %2 = vector.load %arg0[%c0_3, %c0_4] : memref<64x16xf32, #tpu.memory_space<vmem>>, vector<64x16xf32>
    %cst = arith.constant dense<0.000000e+00> : vector<64x96xf32>
    %3 = tpu.matmul %2, %0, %cst {dimension_numbers = #tpu.dot_dimension_numbers<[1], [0], [0], [1], [0, 0, 1, 1], [], []>} : vector<64x16xf32>, vector<16x96xf32>, vector<64x96xf32> -> vector<64x96xf32>
    %4 = vector.broadcast %1 : vector<1x96xf32> to vector<64x96xf32>
    %5 = arith.addf %3, %4 : vector<64x96xf32>
    %c0_5 = arith.constant 0 : index
    %c0_6 = arith.constant 0 : index
    %6 = vector.load %arg4[%c0_5, %c0_6] : memref<64x96xf32, #tpu.memory_space<vmem>>, vector<64x96xf32>
    tpu.vector_store %arg4[%c0_5, %c0_6], %5 {strides = array<i32>} : memref<64x96xf32, #tpu.memory_space<vmem>>, vector<64x96xf32>,
    %c16 = arith.constant 16 : index
    %c0_7 = arith.constant 0 : index
    %7 = vector.load %arg1[%c16, %c0_7] : memref<144x96xf32, #tpu.memory_space<vmem>>, vector<32x96xf32>
    %c8 = arith.constant 8 : index
    %c0_8 = arith.constant 0 : index
    %8 = vector.load %arg2[%c8, %c0_8] : memref<40x96xf32, #tpu.memory_space<vmem>>, vector<1x96xf32>
    %9 = vector.shape_cast %8 : vector<1x96xf32> to vector<1x96xf32>
    %10 = vector.broadcast %9 : vector<1x96xf32> to vector<8x96xf32>
    %cst_9 = arith.constant 0.000000e+00 : f32
    %11 = vector.broadcast %cst_9 : f32 to vector<8x32xf32>
    %c0_10 = arith.constant 0 : index
    %c0_11 = arith.constant 0 : index
    %12 = vector.load %arg4[%c0_10, %c0_11] : memref<64x96xf32, #tpu.memory_space<vmem>>, vector<8x96xf32>
    %cst_12 = arith.constant dense<0.000000e+00> : vector<8x96xf32>
    %13 = tpu.matmul %11, %7, %cst_12 {dimension_numbers = #tpu.dot_dimension_numbers<[1], [0], [0], [1], [0, 0, 1, 1], [], []>} : vector<8x32xf32>, vector<32x96xf32>, vector<8x96xf32> -> vector<8x96xf32>
    %14 = arith.addf %13, %10 : vector<8x96xf32>
    %15 = vector.extract_strided_slice %12 {offsets = [0, 0], sizes = [8, 64], strides = [1, 1]} : vector<8x96xf32> to vector<8x64xf32>
    %16 = vector.extract_strided_slice %14 {offsets = [0, 0], sizes = [8, 64], strides = [1, 1]} : vector<8x96xf32> to vector<8x64xf32>
    %17 = arith.addf %15, %16 : vector<8x64xf32>
    %18 = arith.negf %17 : vector<8x64xf32>
    %19 = math.exp %18 : vector<8x64xf32>
    %cst_13 = arith.constant 1.000000e+00 : f32
    %20 = vector.broadcast %cst_13 : f32 to vector<8x64xf32>
    %21 = arith.addf %20, %19 : vector<8x64xf32>
    %22 = arith.divf %20, %21 : vector<8x64xf32>
    %23 = vector.extract_strided_slice %22 {offsets = [0, 0], sizes = [8, 32], strides = [1, 1]} : vector<8x64xf32> to vector<8x32xf32>
    %24 = vector.extract_strided_slice %22 {offsets = [0, 32], sizes = [8, 32], strides = [1, 1]} : vector<8x64xf32> to vector<8x32xf32>
    %25 = vector.extract_strided_slice %12 {offsets = [0, 64], sizes = [8, 32], strides = [1, 1]} : vector<8x96xf32> to vector<8x32xf32>
    %26 = vector.extract_strided_slice %14 {offsets = [0, 64], sizes = [8, 32], strides = [1, 1]} : vector<8x96xf32> to vector<8x32xf32>
    %27 = arith.mulf %23, %26 : vector<8x32xf32>
    %28 = arith.addf %25, %27 : vector<8x32xf32>
    %29 = math.tanh %28 : vector<8x32xf32>
    %cst_14 = arith.constant 1.000000e+00 : f32
    %30 = vector.broadcast %cst_14 : f32 to vector<8x32xf32>
    %31 = arith.subf %30, %24 : vector<8x32xf32>
    %32 = arith.mulf %31, %29 : vector<8x32xf32>
    %33 = arith.mulf %24, %11 : vector<8x32xf32>
    %34 = arith.addf %32, %33 : vector<8x32xf32>
    %c0_15 = arith.constant 0 : index
    %c0_16 = arith.constant 0 : index
    %35 = vector.load %arg5[%c0_15, %c0_16] : memref<64x32xf32, #tpu.memory_space<vmem>>, vector<8x32xf32>
    tpu.vector_store %arg5[%c0_15, %c0_16], %34 {strides = array<i32>} : memref<64x32xf32, #tpu.memory_space<vmem>>, vector<8x32xf32>,
    %c8_17 = arith.constant 8 : index
    %c0_18 = arith.constant 0 : index
    %36 = vector.load %arg4[%c8_17, %c0_18] : memref<64x96xf32, #tpu.memory_space<vmem>>, vector<8x96xf32>
    %cst_19 = arith.constant dense<0.000000e+00> : vector<8x96xf32>
    %37 = tpu.matmul %34, %7, %cst_19 {dimension_numbers = #tpu.dot_dimension_numbers<[1], [0], [0], [1], [0, 0, 1, 1], [], []>} : vector<8x32xf32>, vector<32x96xf32>, vector<8x96xf32> -> vector<8x96xf32>
    %38 = arith.addf %37, %10 : vector<8x96xf32>
    %39 = vector.extract_strided_slice %36 {offsets = [0, 0], sizes = [8, 64], strides = [1, 1]} : vector<8x96xf32> to vector<8x64xf32>
    %40 = vector.extract_strided_slice %38 {offsets = [0, 0], sizes = [8, 64], strides = [1, 1]} : vector<8x96xf32> to vector<8x64xf32>
    %41 = arith.addf %39, %40 : vector<8x64xf32>
    %42 = arith.negf %41 : vector<8x64xf32>
    %43 = math.exp %42 : vector<8x64xf32>
    %cst_20 = arith.constant 1.000000e+00 : f32
    %44 = vector.broadcast %cst_20 : f32 to vector<8x64xf32>
    %45 = arith.addf %44, %43 : vector<8x64xf32>
    %46 = arith.divf %44, %45 : vector<8x64xf32>
    %47 = vector.extract_strided_slice %46 {offsets = [0, 0], sizes = [8, 32], strides = [1, 1]} : vector<8x64xf32> to vector<8x32xf32>
    %48 = vector.extract_strided_slice %46 {offsets = [0, 32], sizes = [8, 32], strides = [1, 1]} : vector<8x64xf32> to vector<8x32xf32>
    %49 = vector.extract_strided_slice %36 {offsets = [0, 64], sizes = [8, 32], strides = [1, 1]} : vector<8x96xf32> to vector<8x32xf32>
    %50 = vector.extract_strided_slice %38 {offsets = [0, 64], sizes = [8, 32], strides = [1, 1]} : vector<8x96xf32> to vector<8x32xf32>
    %51 = arith.mulf %47, %50 : vector<8x32xf32>
    %52 = arith.addf %49, %51 : vector<8x32xf32>
    %53 = math.tanh %52 : vector<8x32xf32>
    %cst_21 = arith.constant 1.000000e+00 : f32
    %54 = vector.broadcast %cst_21 : f32 to vector<8x32xf32>
    %55 = arith.subf %54, %48 : vector<8x32xf32>
    %56 = arith.mulf %55, %53 : vector<8x32xf32>
    %57 = arith.mulf %48, %34 : vector<8x32xf32>
    %58 = arith.addf %56, %57 : vector<8x32xf32>
    %c8_22 = arith.constant 8 : index
    %c0_23 = arith.constant 0 : index
    %59 = vector.load %arg5[%c8_22, %c0_23] : memref<64x32xf32, #tpu.memory_space<vmem>>, vector<8x32xf32>
    tpu.vector_store %arg5[%c8_22, %c0_23], %58 {strides = array<i32>} : memref<64x32xf32, #tpu.memory_space<vmem>>, vector<8x32xf32>,
    %c16_24 = arith.constant 16 : index
    %c0_25 = arith.constant 0 : index
    %60 = vector.load %arg4[%c16_24, %c0_25] : memref<64x96xf32, #tpu.memory_space<vmem>>, vector<8x96xf32>
    %cst_26 = arith.constant dense<0.000000e+00> : vector<8x96xf32>
    %61 = tpu.matmul %58, %7, %cst_26 {dimension_numbers = #tpu.dot_dimension_numbers<[1], [0], [0], [1], [0, 0, 1, 1], [], []>} : vector<8x32xf32>, vector<32x96xf32>, vector<8x96xf32> -> vector<8x96xf32>
    %62 = arith.addf %61, %10 : vector<8x96xf32>
    %63 = vector.extract_strided_slice %60 {offsets = [0, 0], sizes = [8, 64], strides = [1, 1]} : vector<8x96xf32> to vector<8x64xf32>
    %64 = vector.extract_strided_slice %62 {offsets = [0, 0], sizes = [8, 64], strides = [1, 1]} : vector<8x96xf32> to vector<8x64xf32>
    %65 = arith.addf %63, %64 : vector<8x64xf32>
    %66 = arith.negf %65 : vector<8x64xf32>
    %67 = math.exp %66 : vector<8x64xf32>
    %cst_27 = arith.constant 1.000000e+00 : f32
    %68 = vector.broadcast %cst_27 : f32 to vector<8x64xf32>
    %69 = arith.addf %68, %67 : vector<8x64xf32>
    %70 = arith.divf %68, %69 : vector<8x64xf32>
    %71 = vector.extract_strided_slice %70 {offsets = [0, 0], sizes = [8, 32], strides = [1, 1]} : vector<8x64xf32> to vector<8x32xf32>
    %72 = vector.extract_strided_slice %70 {offsets = [0, 32], sizes = [8, 32], strides = [1, 1]} : vector<8x64xf32> to vector<8x32xf32>
    %73 = vector.extract_strided_slice %60 {offsets = [0, 64], sizes = [8, 32], strides = [1, 1]} : vector<8x96xf32> to vector<8x32xf32>
    %74 = vector.extract_strided_slice %62 {offsets = [0, 64], sizes = [8, 32], strides = [1, 1]} : vector<8x96xf32> to vector<8x32xf32>
    %75 = arith.mulf %71, %74 : vector<8x32xf32>
    %76 = arith.addf %73, %75 : vector<8x32xf32>
    %77 = math.tanh %76 : vector<8x32xf32>
    %cst_28 = arith.constant 1.000000e+00 : f32
    %78 = vector.broadcast %cst_28 : f32 to vector<8x32xf32>
    %79 = arith.subf %78, %72 : vector<8x32xf32>
    %80 = arith.mulf %79, %77 : vector<8x32xf32>
    %81 = arith.mulf %72, %58 : vector<8x32xf32>
    %82 = arith.addf %80, %81 : vector<8x32xf32>
    %c16_29 = arith.constant 16 : index
    %c0_30 = arith.constant 0 : index
    %83 = vector.load %arg5[%c16_29, %c0_30] : memref<64x32xf32, #tpu.memory_space<vmem>>, vector<8x32xf32>
    tpu.vector_store %arg5[%c16_29, %c0_30], %82 {strides = array<i32>} : memref<64x32xf32, #tpu.memory_space<vmem>>, vector<8x32xf32>,
    %c24 = arith.constant 24 : index
    %c0_31 = arith.constant 0 : index
    %84 = vector.load %arg4[%c24, %c0_31] : memref<64x96xf32, #tpu.memory_space<vmem>>, vector<8x96xf32>
    %cst_32 = arith.constant dense<0.000000e+00> : vector<8x96xf32>
    %85 = tpu.matmul %82, %7, %cst_32 {dimension_numbers = #tpu.dot_dimension_numbers<[1], [0], [0], [1], [0, 0, 1, 1], [], []>} : vector<8x32xf32>, vector<32x96xf32>, vector<8x96xf32> -> vector<8x96xf32>
    %86 = arith.addf %85, %10 : vector<8x96xf32>
    %87 = vector.extract_strided_slice %84 {offsets = [0, 0], sizes = [8, 64], strides = [1, 1]} : vector<8x96xf32> to vector<8x64xf32>
    %88 = vector.extract_strided_slice %86 {offsets = [0, 0], sizes = [8, 64], strides = [1, 1]} : vector<8x96xf32> to vector<8x64xf32>
    %89 = arith.addf %87, %88 : vector<8x64xf32>
    %90 = arith.negf %89 : vector<8x64xf32>
    %91 = math.exp %90 : vector<8x64xf32>
    %cst_33 = arith.constant 1.000000e+00 : f32
    %92 = vector.broadcast %cst_33 : f32 to vector<8x64xf32>
    %93 = arith.addf %92, %91 : vector<8x64xf32>
    %94 = arith.divf %92, %93 : vector<8x64xf32>
    %95 = vector.extract_strided_slice %94 {offsets = [0, 0], sizes = [8, 32], strides = [1, 1]} : vector<8x64xf32> to vector<8x32xf32>
    %96 = vector.extract_strided_slice %94 {offsets = [0, 32], sizes = [8, 32], strides = [1, 1]} : vector<8x64xf32> to vector<8x32xf32>
    %97 = vector.extract_strided_slice %84 {offsets = [0, 64], sizes = [8, 32], strides = [1, 1]} : vector<8x96xf32> to vector<8x32xf32>
    %98 = vector.extract_strided_slice %86 {offsets = [0, 64], sizes = [8, 32], strides = [1, 1]} : vector<8x96xf32> to vector<8x32xf32>
    %99 = arith.mulf %95, %98 : vector<8x32xf32>
    %100 = arith.addf %97, %99 : vector<8x32xf32>
    %101 = math.tanh %100 : vector<8x32xf32>
    %cst_34 = arith.constant 1.000000e+00 : f32
    %102 = vector.broadcast %cst_34 : f32 to vector<8x32xf32>
    %103 = arith.subf %102, %96 : vector<8x32xf32>
    %104 = arith.mulf %103, %101 : vector<8x32xf32>
    %105 = arith.mulf %96, %82 : vector<8x32xf32>
    %106 = arith.addf %104, %105 : vector<8x32xf32>
    %c24_35 = arith.constant 24 : index
    %c0_36 = arith.constant 0 : index
    %107 = vector.load %arg5[%c24_35, %c0_36] : memref<64x32xf32, #tpu.memory_space<vmem>>, vector<8x32xf32>
    tpu.vector_store %arg5[%c24_35, %c0_36], %106 {strides = array<i32>} : memref<64x32xf32, #tpu.memory_space<vmem>>, vector<8x32xf32>,
    %c32 = arith.constant 32 : index
    %c0_37 = arith.constant 0 : index
    %108 = vector.load %arg4[%c32, %c0_37] : memref<64x96xf32, #tpu.memory_space<vmem>>, vector<8x96xf32>
    %cst_38 = arith.constant dense<0.000000e+00> : vector<8x96xf32>
    %109 = tpu.matmul %106, %7, %cst_38 {dimension_numbers = #tpu.dot_dimension_numbers<[1], [0], [0], [1], [0, 0, 1, 1], [], []>} : vector<8x32xf32>, vector<32x96xf32>, vector<8x96xf32> -> vector<8x96xf32>
    %110 = arith.addf %109, %10 : vector<8x96xf32>
    %111 = vector.extract_strided_slice %108 {offsets = [0, 0], sizes = [8, 64], strides = [1, 1]} : vector<8x96xf32> to vector<8x64xf32>
    %112 = vector.extract_strided_slice %110 {offsets = [0, 0], sizes = [8, 64], strides = [1, 1]} : vector<8x96xf32> to vector<8x64xf32>
    %113 = arith.addf %111, %112 : vector<8x64xf32>
    %114 = arith.negf %113 : vector<8x64xf32>
    %115 = math.exp %114 : vector<8x64xf32>
    %cst_39 = arith.constant 1.000000e+00 : f32
    %116 = vector.broadcast %cst_39 : f32 to vector<8x64xf32>
    %117 = arith.addf %116, %115 : vector<8x64xf32>
    %118 = arith.divf %116, %117 : vector<8x64xf32>
    %119 = vector.extract_strided_slice %118 {offsets = [0, 0], sizes = [8, 32], strides = [1, 1]} : vector<8x64xf32> to vector<8x32xf32>
    %120 = vector.extract_strided_slice %118 {offsets = [0, 32], sizes = [8, 32], strides = [1, 1]} : vector<8x64xf32> to vector<8x32xf32>
    %121 = vector.extract_strided_slice %108 {offsets = [0, 64], sizes = [8, 32], strides = [1, 1]} : vector<8x96xf32> to vector<8x32xf32>
    %122 = vector.extract_strided_slice %110 {offsets = [0, 64], sizes = [8, 32], strides = [1, 1]} : vector<8x96xf32> to vector<8x32xf32>
    %123 = arith.mulf %119, %122 : vector<8x32xf32>
    %124 = arith.addf %121, %123 : vector<8x32xf32>
    %125 = math.tanh %124 : vector<8x32xf32>
    %cst_40 = arith.constant 1.000000e+00 : f32
    %126 = vector.broadcast %cst_40 : f32 to vector<8x32xf32>
    %127 = arith.subf %126, %120 : vector<8x32xf32>
    %128 = arith.mulf %127, %125 : vector<8x32xf32>
    %129 = arith.mulf %120, %106 : vector<8x32xf32>
    %130 = arith.addf %128, %129 : vector<8x32xf32>
    %c32_41 = arith.constant 32 : index
    %c0_42 = arith.constant 0 : index
    %131 = vector.load %arg5[%c32_41, %c0_42] : memref<64x32xf32, #tpu.memory_space<vmem>>, vector<8x32xf32>
    tpu.vector_store %arg5[%c32_41, %c0_42], %130 {strides = array<i32>} : memref<64x32xf32, #tpu.memory_space<vmem>>, vector<8x32xf32>,
    %c40 = arith.constant 40 : index
    %c0_43 = arith.constant 0 : index
    %132 = vector.load %arg4[%c40, %c0_43] : memref<64x96xf32, #tpu.memory_space<vmem>>, vector<8x96xf32>
    %cst_44 = arith.constant dense<0.000000e+00> : vector<8x96xf32>
    %133 = tpu.matmul %130, %7, %cst_44 {dimension_numbers = #tpu.dot_dimension_numbers<[1], [0], [0], [1], [0, 0, 1, 1], [], []>} : vector<8x32xf32>, vector<32x96xf32>, vector<8x96xf32> -> vector<8x96xf32>
    %134 = arith.addf %133, %10 : vector<8x96xf32>
    %135 = vector.extract_strided_slice %132 {offsets = [0, 0], sizes = [8, 64], strides = [1, 1]} : vector<8x96xf32> to vector<8x64xf32>
    %136 = vector.extract_strided_slice %134 {offsets = [0, 0], sizes = [8, 64], strides = [1, 1]} : vector<8x96xf32> to vector<8x64xf32>
    %137 = arith.addf %135, %136 : vector<8x64xf32>
    %138 = arith.negf %137 : vector<8x64xf32>
    %139 = math.exp %138 : vector<8x64xf32>
    %cst_45 = arith.constant 1.000000e+00 : f32
    %140 = vector.broadcast %cst_45 : f32 to vector<8x64xf32>
    %141 = arith.addf %140, %139 : vector<8x64xf32>
    %142 = arith.divf %140, %141 : vector<8x64xf32>
    %143 = vector.extract_strided_slice %142 {offsets = [0, 0], sizes = [8, 32], strides = [1, 1]} : vector<8x64xf32> to vector<8x32xf32>
    %144 = vector.extract_strided_slice %142 {offsets = [0, 32], sizes = [8, 32], strides = [1, 1]} : vector<8x64xf32> to vector<8x32xf32>
    %145 = vector.extract_strided_slice %132 {offsets = [0, 64], sizes = [8, 32], strides = [1, 1]} : vector<8x96xf32> to vector<8x32xf32>
    %146 = vector.extract_strided_slice %134 {offsets = [0, 64], sizes = [8, 32], strides = [1, 1]} : vector<8x96xf32> to vector<8x32xf32>
    %147 = arith.mulf %143, %146 : vector<8x32xf32>
    %148 = arith.addf %145, %147 : vector<8x32xf32>
    %149 = math.tanh %148 : vector<8x32xf32>
    %cst_46 = arith.constant 1.000000e+00 : f32
    %150 = vector.broadcast %cst_46 : f32 to vector<8x32xf32>
    %151 = arith.subf %150, %144 : vector<8x32xf32>
    %152 = arith.mulf %151, %149 : vector<8x32xf32>
    %153 = arith.mulf %144, %130 : vector<8x32xf32>
    %154 = arith.addf %152, %153 : vector<8x32xf32>
    %c40_47 = arith.constant 40 : index
    %c0_48 = arith.constant 0 : index
    %155 = vector.load %arg5[%c40_47, %c0_48] : memref<64x32xf32, #tpu.memory_space<vmem>>, vector<8x32xf32>
    tpu.vector_store %arg5[%c40_47, %c0_48], %154 {strides = array<i32>} : memref<64x32xf32, #tpu.memory_space<vmem>>, vector<8x32xf32>,
    %c48 = arith.constant 48 : index
    %c0_49 = arith.constant 0 : index
    %156 = vector.load %arg4[%c48, %c0_49] : memref<64x96xf32, #tpu.memory_space<vmem>>, vector<8x96xf32>
    %cst_50 = arith.constant dense<0.000000e+00> : vector<8x96xf32>
    %157 = tpu.matmul %154, %7, %cst_50 {dimension_numbers = #tpu.dot_dimension_numbers<[1], [0], [0], [1], [0, 0, 1, 1], [], []>} : vector<8x32xf32>, vector<32x96xf32>, vector<8x96xf32> -> vector<8x96xf32>
    %158 = arith.addf %157, %10 : vector<8x96xf32>
    %159 = vector.extract_strided_slice %156 {offsets = [0, 0], sizes = [8, 64], strides = [1, 1]} : vector<8x96xf32> to vector<8x64xf32>
    %160 = vector.extract_strided_slice %158 {offsets = [0, 0], sizes = [8, 64], strides = [1, 1]} : vector<8x96xf32> to vector<8x64xf32>
    %161 = arith.addf %159, %160 : vector<8x64xf32>
    %162 = arith.negf %161 : vector<8x64xf32>
    %163 = math.exp %162 : vector<8x64xf32>
    %cst_51 = arith.constant 1.000000e+00 : f32
    %164 = vector.broadcast %cst_51 : f32 to vector<8x64xf32>
    %165 = arith.addf %164, %163 : vector<8x64xf32>
    %166 = arith.divf %164, %165 : vector<8x64xf32>
    %167 = vector.extract_strided_slice %166 {offsets = [0, 0], sizes = [8, 32], strides = [1, 1]} : vector<8x64xf32> to vector<8x32xf32>
    %168 = vector.extract_strided_slice %166 {offsets = [0, 32], sizes = [8, 32], strides = [1, 1]} : vector<8x64xf32> to vector<8x32xf32>
    %169 = vector.extract_strided_slice %156 {offsets = [0, 64], sizes = [8, 32], strides = [1, 1]} : vector<8x96xf32> to vector<8x32xf32>
    %170 = vector.extract_strided_slice %158 {offsets = [0, 64], sizes = [8, 32], strides = [1, 1]} : vector<8x96xf32> to vector<8x32xf32>
    %171 = arith.mulf %167, %170 : vector<8x32xf32>
    %172 = arith.addf %169, %171 : vector<8x32xf32>
    %173 = math.tanh %172 : vector<8x32xf32>
    %cst_52 = arith.constant 1.000000e+00 : f32
    %174 = vector.broadcast %cst_52 : f32 to vector<8x32xf32>
    %175 = arith.subf %174, %168 : vector<8x32xf32>
    %176 = arith.mulf %175, %173 : vector<8x32xf32>
    %177 = arith.mulf %168, %154 : vector<8x32xf32>
    %178 = arith.addf %176, %177 : vector<8x32xf32>
    %c48_53 = arith.constant 48 : index
    %c0_54 = arith.constant 0 : index
    %179 = vector.load %arg5[%c48_53, %c0_54] : memref<64x32xf32, #tpu.memory_space<vmem>>, vector<8x32xf32>
    tpu.vector_store %arg5[%c48_53, %c0_54], %178 {strides = array<i32>} : memref<64x32xf32, #tpu.memory_space<vmem>>, vector<8x32xf32>,
    %c56 = arith.constant 56 : index
    %c0_55 = arith.constant 0 : index
    %180 = vector.load %arg4[%c56, %c0_55] : memref<64x96xf32, #tpu.memory_space<vmem>>, vector<8x96xf32>
    %cst_56 = arith.constant dense<0.000000e+00> : vector<8x96xf32>
    %181 = tpu.matmul %178, %7, %cst_56 {dimension_numbers = #tpu.dot_dimension_numbers<[1], [0], [0], [1], [0, 0, 1, 1], [], []>} : vector<8x32xf32>, vector<32x96xf32>, vector<8x96xf32> -> vector<8x96xf32>
    %182 = arith.addf %181, %10 : vector<8x96xf32>
    %183 = vector.extract_strided_slice %180 {offsets = [0, 0], sizes = [8, 64], strides = [1, 1]} : vector<8x96xf32> to vector<8x64xf32>
    %184 = vector.extract_strided_slice %182 {offsets = [0, 0], sizes = [8, 64], strides = [1, 1]} : vector<8x96xf32> to vector<8x64xf32>
    %185 = arith.addf %183, %184 : vector<8x64xf32>
    %186 = arith.negf %185 : vector<8x64xf32>
    %187 = math.exp %186 : vector<8x64xf32>
    %cst_57 = arith.constant 1.000000e+00 : f32
    %188 = vector.broadcast %cst_57 : f32 to vector<8x64xf32>
    %189 = arith.addf %188, %187 : vector<8x64xf32>
    %190 = arith.divf %188, %189 : vector<8x64xf32>
    %191 = vector.extract_strided_slice %190 {offsets = [0, 0], sizes = [8, 32], strides = [1, 1]} : vector<8x64xf32> to vector<8x32xf32>
    %192 = vector.extract_strided_slice %190 {offsets = [0, 32], sizes = [8, 32], strides = [1, 1]} : vector<8x64xf32> to vector<8x32xf32>
    %193 = vector.extract_strided_slice %180 {offsets = [0, 64], sizes = [8, 32], strides = [1, 1]} : vector<8x96xf32> to vector<8x32xf32>
    %194 = vector.extract_strided_slice %182 {offsets = [0, 64], sizes = [8, 32], strides = [1, 1]} : vector<8x96xf32> to vector<8x32xf32>
    %195 = arith.mulf %191, %194 : vector<8x32xf32>
    %196 = arith.addf %193, %195 : vector<8x32xf32>
    %197 = math.tanh %196 : vector<8x32xf32>
    %cst_58 = arith.constant 1.000000e+00 : f32
    %198 = vector.broadcast %cst_58 : f32 to vector<8x32xf32>
    %199 = arith.subf %198, %192 : vector<8x32xf32>
    %200 = arith.mulf %199, %197 : vector<8x32xf32>
    %201 = arith.mulf %192, %178 : vector<8x32xf32>
    %202 = arith.addf %200, %201 : vector<8x32xf32>
    %c56_59 = arith.constant 56 : index
    %c0_60 = arith.constant 0 : index
    %203 = vector.load %arg5[%c56_59, %c0_60] : memref<64x32xf32, #tpu.memory_space<vmem>>, vector<8x32xf32>
    tpu.vector_store %arg5[%c56_59, %c0_60], %202 {strides = array<i32>} : memref<64x32xf32, #tpu.memory_space<vmem>>, vector<8x32xf32>,
    %c48_61 = arith.constant 48 : index
    %c0_62 = arith.constant 0 : index
    %204 = vector.load %arg1[%c48_61, %c0_62] : memref<144x96xf32, #tpu.memory_space<vmem>>, vector<32x96xf32>
    %c16_63 = arith.constant 16 : index
    %c0_64 = arith.constant 0 : index
    %205 = vector.load %arg2[%c16_63, %c0_64] : memref<40x96xf32, #tpu.memory_space<vmem>>, vector<1x96xf32>
    %c0_65 = arith.constant 0 : index
    %c0_66 = arith.constant 0 : index
    %206 = vector.load %arg5[%c0_65, %c0_66] : memref<64x32xf32, #tpu.memory_space<vmem>>, vector<64x32xf32>
    %cst_67 = arith.constant dense<0.000000e+00> : vector<64x96xf32>
    %207 = tpu.matmul %206, %204, %cst_67 {dimension_numbers = #tpu.dot_dimension_numbers<[1], [0], [0], [1], [0, 0, 1, 1], [], []>} : vector<64x32xf32>, vector<32x96xf32>, vector<64x96xf32> -> vector<64x96xf32>
    %208 = vector.broadcast %205 : vector<1x96xf32> to vector<64x96xf32>
    %209 = arith.addf %207, %208 : vector<64x96xf32>
    %c0_68 = arith.constant 0 : index
    %c0_69 = arith.constant 0 : index
    %210 = vector.load %arg4[%c0_68, %c0_69] : memref<64x96xf32, #tpu.memory_space<vmem>>, vector<64x96xf32>
    tpu.vector_store %arg4[%c0_68, %c0_69], %209 {strides = array<i32>} : memref<64x96xf32, #tpu.memory_space<vmem>>, vector<64x96xf32>,
    %c80 = arith.constant 80 : index
    %c0_70 = arith.constant 0 : index
    %211 = vector.load %arg1[%c80, %c0_70] : memref<144x96xf32, #tpu.memory_space<vmem>>, vector<32x96xf32>
    %c24_71 = arith.constant 24 : index
    %c0_72 = arith.constant 0 : index
    %212 = vector.load %arg2[%c24_71, %c0_72] : memref<40x96xf32, #tpu.memory_space<vmem>>, vector<1x96xf32>
    %213 = vector.shape_cast %212 : vector<1x96xf32> to vector<1x96xf32>
    %214 = vector.broadcast %213 : vector<1x96xf32> to vector<8x96xf32>
    %cst_73 = arith.constant 0.000000e+00 : f32
    %215 = vector.broadcast %cst_73 : f32 to vector<8x32xf32>
    %c0_74 = arith.constant 0 : index
    %c0_75 = arith.constant 0 : index
    %216 = vector.load %arg4[%c0_74, %c0_75] : memref<64x96xf32, #tpu.memory_space<vmem>>, vector<8x96xf32>
    %cst_76 = arith.constant dense<0.000000e+00> : vector<8x96xf32>
    %217 = tpu.matmul %215, %211, %cst_76 {dimension_numbers = #tpu.dot_dimension_numbers<[1], [0], [0], [1], [0, 0, 1, 1], [], []>} : vector<8x32xf32>, vector<32x96xf32>, vector<8x96xf32> -> vector<8x96xf32>
    %218 = arith.addf %217, %214 : vector<8x96xf32>
    %219 = vector.extract_strided_slice %216 {offsets = [0, 0], sizes = [8, 64], strides = [1, 1]} : vector<8x96xf32> to vector<8x64xf32>
    %220 = vector.extract_strided_slice %218 {offsets = [0, 0], sizes = [8, 64], strides = [1, 1]} : vector<8x96xf32> to vector<8x64xf32>
    %221 = arith.addf %219, %220 : vector<8x64xf32>
    %222 = arith.negf %221 : vector<8x64xf32>
    %223 = math.exp %222 : vector<8x64xf32>
    %cst_77 = arith.constant 1.000000e+00 : f32
    %224 = vector.broadcast %cst_77 : f32 to vector<8x64xf32>
    %225 = arith.addf %224, %223 : vector<8x64xf32>
    %226 = arith.divf %224, %225 : vector<8x64xf32>
    %227 = vector.extract_strided_slice %226 {offsets = [0, 0], sizes = [8, 32], strides = [1, 1]} : vector<8x64xf32> to vector<8x32xf32>
    %228 = vector.extract_strided_slice %226 {offsets = [0, 32], sizes = [8, 32], strides = [1, 1]} : vector<8x64xf32> to vector<8x32xf32>
    %229 = vector.extract_strided_slice %216 {offsets = [0, 64], sizes = [8, 32], strides = [1, 1]} : vector<8x96xf32> to vector<8x32xf32>
    %230 = vector.extract_strided_slice %218 {offsets = [0, 64], sizes = [8, 32], strides = [1, 1]} : vector<8x96xf32> to vector<8x32xf32>
    %231 = arith.mulf %227, %230 : vector<8x32xf32>
    %232 = arith.addf %229, %231 : vector<8x32xf32>
    %233 = math.tanh %232 : vector<8x32xf32>
    %cst_78 = arith.constant 1.000000e+00 : f32
    %234 = vector.broadcast %cst_78 : f32 to vector<8x32xf32>
    %235 = arith.subf %234, %228 : vector<8x32xf32>
    %236 = arith.mulf %235, %233 : vector<8x32xf32>
    %237 = arith.mulf %228, %215 : vector<8x32xf32>
    %238 = arith.addf %236, %237 : vector<8x32xf32>
    %c8_79 = arith.constant 8 : index
    %c0_80 = arith.constant 0 : index
    %239 = vector.load %arg4[%c8_79, %c0_80] : memref<64x96xf32, #tpu.memory_space<vmem>>, vector<8x96xf32>
    %cst_81 = arith.constant dense<0.000000e+00> : vector<8x96xf32>
    %240 = tpu.matmul %238, %211, %cst_81 {dimension_numbers = #tpu.dot_dimension_numbers<[1], [0], [0], [1], [0, 0, 1, 1], [], []>} : vector<8x32xf32>, vector<32x96xf32>, vector<8x96xf32> -> vector<8x96xf32>
    %241 = arith.addf %240, %214 : vector<8x96xf32>
    %242 = vector.extract_strided_slice %239 {offsets = [0, 0], sizes = [8, 64], strides = [1, 1]} : vector<8x96xf32> to vector<8x64xf32>
    %243 = vector.extract_strided_slice %241 {offsets = [0, 0], sizes = [8, 64], strides = [1, 1]} : vector<8x96xf32> to vector<8x64xf32>
    %244 = arith.addf %242, %243 : vector<8x64xf32>
    %245 = arith.negf %244 : vector<8x64xf32>
    %246 = math.exp %245 : vector<8x64xf32>
    %cst_82 = arith.constant 1.000000e+00 : f32
    %247 = vector.broadcast %cst_82 : f32 to vector<8x64xf32>
    %248 = arith.addf %247, %246 : vector<8x64xf32>
    %249 = arith.divf %247, %248 : vector<8x64xf32>
    %250 = vector.extract_strided_slice %249 {offsets = [0, 0], sizes = [8, 32], strides = [1, 1]} : vector<8x64xf32> to vector<8x32xf32>
    %251 = vector.extract_strided_slice %249 {offsets = [0, 32], sizes = [8, 32], strides = [1, 1]} : vector<8x64xf32> to vector<8x32xf32>
    %252 = vector.extract_strided_slice %239 {offsets = [0, 64], sizes = [8, 32], strides = [1, 1]} : vector<8x96xf32> to vector<8x32xf32>
    %253 = vector.extract_strided_slice %241 {offsets = [0, 64], sizes = [8, 32], strides = [1, 1]} : vector<8x96xf32> to vector<8x32xf32>
    %254 = arith.mulf %250, %253 : vector<8x32xf32>
    %255 = arith.addf %252, %254 : vector<8x32xf32>
    %256 = math.tanh %255 : vector<8x32xf32>
    %cst_83 = arith.constant 1.000000e+00 : f32
    %257 = vector.broadcast %cst_83 : f32 to vector<8x32xf32>
    %258 = arith.subf %257, %251 : vector<8x32xf32>
    %259 = arith.mulf %258, %256 : vector<8x32xf32>
    %260 = arith.mulf %251, %238 : vector<8x32xf32>
    %261 = arith.addf %259, %260 : vector<8x32xf32>
    %c16_84 = arith.constant 16 : index
    %c0_85 = arith.constant 0 : index
    %262 = vector.load %arg4[%c16_84, %c0_85] : memref<64x96xf32, #tpu.memory_space<vmem>>, vector<8x96xf32>
    %cst_86 = arith.constant dense<0.000000e+00> : vector<8x96xf32>
    %263 = tpu.matmul %261, %211, %cst_86 {dimension_numbers = #tpu.dot_dimension_numbers<[1], [0], [0], [1], [0, 0, 1, 1], [], []>} : vector<8x32xf32>, vector<32x96xf32>, vector<8x96xf32> -> vector<8x96xf32>
    %264 = arith.addf %263, %214 : vector<8x96xf32>
    %265 = vector.extract_strided_slice %262 {offsets = [0, 0], sizes = [8, 64], strides = [1, 1]} : vector<8x96xf32> to vector<8x64xf32>
    %266 = vector.extract_strided_slice %264 {offsets = [0, 0], sizes = [8, 64], strides = [1, 1]} : vector<8x96xf32> to vector<8x64xf32>
    %267 = arith.addf %265, %266 : vector<8x64xf32>
    %268 = arith.negf %267 : vector<8x64xf32>
    %269 = math.exp %268 : vector<8x64xf32>
    %cst_87 = arith.constant 1.000000e+00 : f32
    %270 = vector.broadcast %cst_87 : f32 to vector<8x64xf32>
    %271 = arith.addf %270, %269 : vector<8x64xf32>
    %272 = arith.divf %270, %271 : vector<8x64xf32>
    %273 = vector.extract_strided_slice %272 {offsets = [0, 0], sizes = [8, 32], strides = [1, 1]} : vector<8x64xf32> to vector<8x32xf32>
    %274 = vector.extract_strided_slice %272 {offsets = [0, 32], sizes = [8, 32], strides = [1, 1]} : vector<8x64xf32> to vector<8x32xf32>
    %275 = vector.extract_strided_slice %262 {offsets = [0, 64], sizes = [8, 32], strides = [1, 1]} : vector<8x96xf32> to vector<8x32xf32>
    %276 = vector.extract_strided_slice %264 {offsets = [0, 64], sizes = [8, 32], strides = [1, 1]} : vector<8x96xf32> to vector<8x32xf32>
    %277 = arith.mulf %273, %276 : vector<8x32xf32>
    %278 = arith.addf %275, %277 : vector<8x32xf32>
    %279 = math.tanh %278 : vector<8x32xf32>
    %cst_88 = arith.constant 1.000000e+00 : f32
    %280 = vector.broadcast %cst_88 : f32 to vector<8x32xf32>
    %281 = arith.subf %280, %274 : vector<8x32xf32>
    %282 = arith.mulf %281, %279 : vector<8x32xf32>
    %283 = arith.mulf %274, %261 : vector<8x32xf32>
    %284 = arith.addf %282, %283 : vector<8x32xf32>
    %c24_89 = arith.constant 24 : index
    %c0_90 = arith.constant 0 : index
    %285 = vector.load %arg4[%c24_89, %c0_90] : memref<64x96xf32, #tpu.memory_space<vmem>>, vector<8x96xf32>
    %cst_91 = arith.constant dense<0.000000e+00> : vector<8x96xf32>
    %286 = tpu.matmul %284, %211, %cst_91 {dimension_numbers = #tpu.dot_dimension_numbers<[1], [0], [0], [1], [0, 0, 1, 1], [], []>} : vector<8x32xf32>, vector<32x96xf32>, vector<8x96xf32> -> vector<8x96xf32>
    %287 = arith.addf %286, %214 : vector<8x96xf32>
    %288 = vector.extract_strided_slice %285 {offsets = [0, 0], sizes = [8, 64], strides = [1, 1]} : vector<8x96xf32> to vector<8x64xf32>
    %289 = vector.extract_strided_slice %287 {offsets = [0, 0], sizes = [8, 64], strides = [1, 1]} : vector<8x96xf32> to vector<8x64xf32>
    %290 = arith.addf %288, %289 : vector<8x64xf32>
    %291 = arith.negf %290 : vector<8x64xf32>
    %292 = math.exp %291 : vector<8x64xf32>
    %cst_92 = arith.constant 1.000000e+00 : f32
    %293 = vector.broadcast %cst_92 : f32 to vector<8x64xf32>
    %294 = arith.addf %293, %292 : vector<8x64xf32>
    %295 = arith.divf %293, %294 : vector<8x64xf32>
    %296 = vector.extract_strided_slice %295 {offsets = [0, 0], sizes = [8, 32], strides = [1, 1]} : vector<8x64xf32> to vector<8x32xf32>
    %297 = vector.extract_strided_slice %295 {offsets = [0, 32], sizes = [8, 32], strides = [1, 1]} : vector<8x64xf32> to vector<8x32xf32>
    %298 = vector.extract_strided_slice %285 {offsets = [0, 64], sizes = [8, 32], strides = [1, 1]} : vector<8x96xf32> to vector<8x32xf32>
    %299 = vector.extract_strided_slice %287 {offsets = [0, 64], sizes = [8, 32], strides = [1, 1]} : vector<8x96xf32> to vector<8x32xf32>
    %300 = arith.mulf %296, %299 : vector<8x32xf32>
    %301 = arith.addf %298, %300 : vector<8x32xf32>
    %302 = math.tanh %301 : vector<8x32xf32>
    %cst_93 = arith.constant 1.000000e+00 : f32
    %303 = vector.broadcast %cst_93 : f32 to vector<8x32xf32>
    %304 = arith.subf %303, %297 : vector<8x32xf32>
    %305 = arith.mulf %304, %302 : vector<8x32xf32>
    %306 = arith.mulf %297, %284 : vector<8x32xf32>
    %307 = arith.addf %305, %306 : vector<8x32xf32>
    %c32_94 = arith.constant 32 : index
    %c0_95 = arith.constant 0 : index
    %308 = vector.load %arg4[%c32_94, %c0_95] : memref<64x96xf32, #tpu.memory_space<vmem>>, vector<8x96xf32>
    %cst_96 = arith.constant dense<0.000000e+00> : vector<8x96xf32>
    %309 = tpu.matmul %307, %211, %cst_96 {dimension_numbers = #tpu.dot_dimension_numbers<[1], [0], [0], [1], [0, 0, 1, 1], [], []>} : vector<8x32xf32>, vector<32x96xf32>, vector<8x96xf32> -> vector<8x96xf32>
    %310 = arith.addf %309, %214 : vector<8x96xf32>
    %311 = vector.extract_strided_slice %308 {offsets = [0, 0], sizes = [8, 64], strides = [1, 1]} : vector<8x96xf32> to vector<8x64xf32>
    %312 = vector.extract_strided_slice %310 {offsets = [0, 0], sizes = [8, 64], strides = [1, 1]} : vector<8x96xf32> to vector<8x64xf32>
    %313 = arith.addf %311, %312 : vector<8x64xf32>
    %314 = arith.negf %313 : vector<8x64xf32>
    %315 = math.exp %314 : vector<8x64xf32>
    %cst_97 = arith.constant 1.000000e+00 : f32
    %316 = vector.broadcast %cst_97 : f32 to vector<8x64xf32>
    %317 = arith.addf %316, %315 : vector<8x64xf32>
    %318 = arith.divf %316, %317 : vector<8x64xf32>
    %319 = vector.extract_strided_slice %318 {offsets = [0, 0], sizes = [8, 32], strides = [1, 1]} : vector<8x64xf32> to vector<8x32xf32>
    %320 = vector.extract_strided_slice %318 {offsets = [0, 32], sizes = [8, 32], strides = [1, 1]} : vector<8x64xf32> to vector<8x32xf32>
    %321 = vector.extract_strided_slice %308 {offsets = [0, 64], sizes = [8, 32], strides = [1, 1]} : vector<8x96xf32> to vector<8x32xf32>
    %322 = vector.extract_strided_slice %310 {offsets = [0, 64], sizes = [8, 32], strides = [1, 1]} : vector<8x96xf32> to vector<8x32xf32>
    %323 = arith.mulf %319, %322 : vector<8x32xf32>
    %324 = arith.addf %321, %323 : vector<8x32xf32>
    %325 = math.tanh %324 : vector<8x32xf32>
    %cst_98 = arith.constant 1.000000e+00 : f32
    %326 = vector.broadcast %cst_98 : f32 to vector<8x32xf32>
    %327 = arith.subf %326, %320 : vector<8x32xf32>
    %328 = arith.mulf %327, %325 : vector<8x32xf32>
    %329 = arith.mulf %320, %307 : vector<8x32xf32>
    %330 = arith.addf %328, %329 : vector<8x32xf32>
    %c40_99 = arith.constant 40 : index
    %c0_100 = arith.constant 0 : index
    %331 = vector.load %arg4[%c40_99, %c0_100] : memref<64x96xf32, #tpu.memory_space<vmem>>, vector<8x96xf32>
    %cst_101 = arith.constant dense<0.000000e+00> : vector<8x96xf32>
    %332 = tpu.matmul %330, %211, %cst_101 {dimension_numbers = #tpu.dot_dimension_numbers<[1], [0], [0], [1], [0, 0, 1, 1], [], []>} : vector<8x32xf32>, vector<32x96xf32>, vector<8x96xf32> -> vector<8x96xf32>
    %333 = arith.addf %332, %214 : vector<8x96xf32>
    %334 = vector.extract_strided_slice %331 {offsets = [0, 0], sizes = [8, 64], strides = [1, 1]} : vector<8x96xf32> to vector<8x64xf32>
    %335 = vector.extract_strided_slice %333 {offsets = [0, 0], sizes = [8, 64], strides = [1, 1]} : vector<8x96xf32> to vector<8x64xf32>
    %336 = arith.addf %334, %335 : vector<8x64xf32>
    %337 = arith.negf %336 : vector<8x64xf32>
    %338 = math.exp %337 : vector<8x64xf32>
    %cst_102 = arith.constant 1.000000e+00 : f32
    %339 = vector.broadcast %cst_102 : f32 to vector<8x64xf32>
    %340 = arith.addf %339, %338 : vector<8x64xf32>
    %341 = arith.divf %339, %340 : vector<8x64xf32>
    %342 = vector.extract_strided_slice %341 {offsets = [0, 0], sizes = [8, 32], strides = [1, 1]} : vector<8x64xf32> to vector<8x32xf32>
    %343 = vector.extract_strided_slice %341 {offsets = [0, 32], sizes = [8, 32], strides = [1, 1]} : vector<8x64xf32> to vector<8x32xf32>
    %344 = vector.extract_strided_slice %331 {offsets = [0, 64], sizes = [8, 32], strides = [1, 1]} : vector<8x96xf32> to vector<8x32xf32>
    %345 = vector.extract_strided_slice %333 {offsets = [0, 64], sizes = [8, 32], strides = [1, 1]} : vector<8x96xf32> to vector<8x32xf32>
    %346 = arith.mulf %342, %345 : vector<8x32xf32>
    %347 = arith.addf %344, %346 : vector<8x32xf32>
    %348 = math.tanh %347 : vector<8x32xf32>
    %cst_103 = arith.constant 1.000000e+00 : f32
    %349 = vector.broadcast %cst_103 : f32 to vector<8x32xf32>
    %350 = arith.subf %349, %343 : vector<8x32xf32>
    %351 = arith.mulf %350, %348 : vector<8x32xf32>
    %352 = arith.mulf %343, %330 : vector<8x32xf32>
    %353 = arith.addf %351, %352 : vector<8x32xf32>
    %c48_104 = arith.constant 48 : index
    %c0_105 = arith.constant 0 : index
    %354 = vector.load %arg4[%c48_104, %c0_105] : memref<64x96xf32, #tpu.memory_space<vmem>>, vector<8x96xf32>
    %cst_106 = arith.constant dense<0.000000e+00> : vector<8x96xf32>
    %355 = tpu.matmul %353, %211, %cst_106 {dimension_numbers = #tpu.dot_dimension_numbers<[1], [0], [0], [1], [0, 0, 1, 1], [], []>} : vector<8x32xf32>, vector<32x96xf32>, vector<8x96xf32> -> vector<8x96xf32>
    %356 = arith.addf %355, %214 : vector<8x96xf32>
    %357 = vector.extract_strided_slice %354 {offsets = [0, 0], sizes = [8, 64], strides = [1, 1]} : vector<8x96xf32> to vector<8x64xf32>
    %358 = vector.extract_strided_slice %356 {offsets = [0, 0], sizes = [8, 64], strides = [1, 1]} : vector<8x96xf32> to vector<8x64xf32>
    %359 = arith.addf %357, %358 : vector<8x64xf32>
    %360 = arith.negf %359 : vector<8x64xf32>
    %361 = math.exp %360 : vector<8x64xf32>
    %cst_107 = arith.constant 1.000000e+00 : f32
    %362 = vector.broadcast %cst_107 : f32 to vector<8x64xf32>
    %363 = arith.addf %362, %361 : vector<8x64xf32>
    %364 = arith.divf %362, %363 : vector<8x64xf32>
    %365 = vector.extract_strided_slice %364 {offsets = [0, 0], sizes = [8, 32], strides = [1, 1]} : vector<8x64xf32> to vector<8x32xf32>
    %366 = vector.extract_strided_slice %364 {offsets = [0, 32], sizes = [8, 32], strides = [1, 1]} : vector<8x64xf32> to vector<8x32xf32>
    %367 = vector.extract_strided_slice %354 {offsets = [0, 64], sizes = [8, 32], strides = [1, 1]} : vector<8x96xf32> to vector<8x32xf32>
    %368 = vector.extract_strided_slice %356 {offsets = [0, 64], sizes = [8, 32], strides = [1, 1]} : vector<8x96xf32> to vector<8x32xf32>
    %369 = arith.mulf %365, %368 : vector<8x32xf32>
    %370 = arith.addf %367, %369 : vector<8x32xf32>
    %371 = math.tanh %370 : vector<8x32xf32>
    %cst_108 = arith.constant 1.000000e+00 : f32
    %372 = vector.broadcast %cst_108 : f32 to vector<8x32xf32>
    %373 = arith.subf %372, %366 : vector<8x32xf32>
    %374 = arith.mulf %373, %371 : vector<8x32xf32>
    %375 = arith.mulf %366, %353 : vector<8x32xf32>
    %376 = arith.addf %374, %375 : vector<8x32xf32>
    %c56_109 = arith.constant 56 : index
    %c0_110 = arith.constant 0 : index
    %377 = vector.load %arg4[%c56_109, %c0_110] : memref<64x96xf32, #tpu.memory_space<vmem>>, vector<8x96xf32>
    %cst_111 = arith.constant dense<0.000000e+00> : vector<8x96xf32>
    %378 = tpu.matmul %376, %211, %cst_111 {dimension_numbers = #tpu.dot_dimension_numbers<[1], [0], [0], [1], [0, 0, 1, 1], [], []>} : vector<8x32xf32>, vector<32x96xf32>, vector<8x96xf32> -> vector<8x96xf32>
    %379 = arith.addf %378, %214 : vector<8x96xf32>
    %380 = vector.extract_strided_slice %377 {offsets = [0, 0], sizes = [8, 64], strides = [1, 1]} : vector<8x96xf32> to vector<8x64xf32>
    %381 = vector.extract_strided_slice %379 {offsets = [0, 0], sizes = [8, 64], strides = [1, 1]} : vector<8x96xf32> to vector<8x64xf32>
    %382 = arith.addf %380, %381 : vector<8x64xf32>
    %383 = arith.negf %382 : vector<8x64xf32>
    %384 = math.exp %383 : vector<8x64xf32>
    %cst_112 = arith.constant 1.000000e+00 : f32
    %385 = vector.broadcast %cst_112 : f32 to vector<8x64xf32>
    %386 = arith.addf %385, %384 : vector<8x64xf32>
    %387 = arith.divf %385, %386 : vector<8x64xf32>
    %388 = vector.extract_strided_slice %387 {offsets = [0, 0], sizes = [8, 32], strides = [1, 1]} : vector<8x64xf32> to vector<8x32xf32>
    %389 = vector.extract_strided_slice %387 {offsets = [0, 32], sizes = [8, 32], strides = [1, 1]} : vector<8x64xf32> to vector<8x32xf32>
    %390 = vector.extract_strided_slice %377 {offsets = [0, 64], sizes = [8, 32], strides = [1, 1]} : vector<8x96xf32> to vector<8x32xf32>
    %391 = vector.extract_strided_slice %379 {offsets = [0, 64], sizes = [8, 32], strides = [1, 1]} : vector<8x96xf32> to vector<8x32xf32>
    %392 = arith.mulf %388, %391 : vector<8x32xf32>
    %393 = arith.addf %390, %392 : vector<8x32xf32>
    %394 = math.tanh %393 : vector<8x32xf32>
    %cst_113 = arith.constant 1.000000e+00 : f32
    %395 = vector.broadcast %cst_113 : f32 to vector<8x32xf32>
    %396 = arith.subf %395, %389 : vector<8x32xf32>
    %397 = arith.mulf %396, %394 : vector<8x32xf32>
    %398 = arith.mulf %389, %376 : vector<8x32xf32>
    %399 = arith.addf %397, %398 : vector<8x32xf32>
    %c112 = arith.constant 112 : index
    %c0_114 = arith.constant 0 : index
    %400 = vector.load %arg1[%c112, %c0_114] : memref<144x96xf32, #tpu.memory_space<vmem>>, vector<32x96xf32>
    %c32_115 = arith.constant 32 : index
    %c0_116 = arith.constant 0 : index
    %401 = vector.load %arg2[%c32_115, %c0_116] : memref<40x96xf32, #tpu.memory_space<vmem>>, vector<1x96xf32>
    %cst_117 = arith.constant dense<0.000000e+00> : vector<8x96xf32>
    %402 = tpu.matmul %399, %400, %cst_117 {dimension_numbers = #tpu.dot_dimension_numbers<[1], [0], [0], [1], [0, 0, 1, 1], [], []>} : vector<8x32xf32>, vector<32x96xf32>, vector<8x96xf32> -> vector<8x96xf32>
    %403 = vector.broadcast %401 : vector<1x96xf32> to vector<8x96xf32>
    %404 = arith.addf %402, %403 : vector<8x96xf32>
    %405 = vector.extract_strided_slice %404 {offsets = [0, 0], sizes = [8, 8], strides = [1, 1]} : vector<8x96xf32> to vector<8x8xf32>
    %c0_118 = arith.constant 0 : index
    %c0_119 = arith.constant 0 : index
    %406 = vector.load %arg3[%c0_118, %c0_119] : memref<8x8xf32, #tpu.memory_space<vmem>>, vector<8x8xf32>
    tpu.vector_store %arg3[%c0_118, %c0_119], %405 {strides = array<i32>} : memref<8x8xf32, #tpu.memory_space<vmem>>, vector<8x8xf32>,
    return
  }
}

</mosaic_0001>

<bundles_post_ra>
// kernel: tpu_custom_call.1
= control target key start
LH: loop header
LB: loop body
LE: loop exit
PB: predicated region body
PF: predicated region fallthrough
CT: control target
= control target key end

     0   :  { %8 = vsyncpa [#allocation5], 0  ;;  %s3119_s0 = inlined_call_operand.vmem [shape: f32[64,16], index: 0, kind: input, shape index: {}]   ;;  %s3120_s1 = inlined_call_operand.hbm [shape: f32[144,96], index: 1, kind: input, shape index: {}]   ;;  %s3121_s2 = inlined_call_operand.vmem [shape: f32[40,96], index: 2, kind: input, shape index: {}]   ;;  %s3122_s3 = inlined_call_operand.hbm [shape: f32[8,8], index: 3, kind: output, shape index: {}]  }
   0x1   :  { %9 = vsyncpa [#allocation6], 0  ;;  %s2750_s12 = smov [#allocation4]   ;;  %s2702_s16 = scalar_lea.hbm %s3120_s1, 2304 }
   0x2   :  { %s17_s13 = sshll.u32 %s2750_s12, 4  ;;  %p2703_p0 = scmp.ne.s32.totalorder %s3120_s1, %s2702_s16  ;;  %s18_s13 = int_to_ptr.vmem [resolvable:$true] %s17_s13 }
   0x3   :  { %p2706_p1 = scmp.lt.u32.totalorder %s2702_s16, %s3120_s1 }
   0x5   :  { %p2708_p2 = pnand %p2706_p1, %p2703_p0 }
   0x7   :  { %2711 = shalt.err (!%p2708_p2)
}
   0x8   :  { %s2712_s21 = scalar_lea.vmem %s18_s13, 2304  ;;  %p2717_p4 = scmp.lt.s32.totalorder %s18_s13, %s18_s13 }
   0x9   :  { %p2713_p3 = scmp.ne.s32.totalorder %s18_s13, %s2712_s21  ;;  %p2718_p5 = scmp.lt.s32.totalorder %s2712_s21, %s2712_s21 }
   0xb   :  { %p2719_p6 = por %p2718_p5, %p2717_p4 }
   0xd   :  { %p2720_p7 = pnand %p2719_p6, %p2713_p3 }
   0xf   :  { %2723 = shalt.err (!%p2720_p7)
}
  0x10   :  { %s2751_s22 = smov 128   ;;  %s2752_s23 = smov 8  }
  0x11   :  { %23 = dma.hbm_to_vmem [thread:$0]  %s3120_s1, 2304, %s18_s13, [#allocation5], %s2751_s22, %s2751_s22, %s2752_s23  }
  0x12   :  { %2746 = dma.done.wait [#allocation5], 2304  }
  0x13   :  { %2747 = vsyncadd [#allocation5], 4294964992  ;;  %v2753_v0 = vmov 0.0|0.0   ;;  %vm2754_vm0 = vmmov 0   ;;  %v2755_v1 = vmov 0.0   ;;  %vm44_vm1 = vcmask 130048  }
  0x14   :  { %2487 = vmatprep.subr.bf16.mxu1 %v2753_v0  ;;  %2284 = vmatprep.mubr.msk.f32.mxu1 %vm2754_vm0, %v2755_v1  ;;  %v29_v2 = vld [vmem:[#allocation4] sm:$0xff]  ;;  %v30_v3 = vld [vmem:[#allocation4 + $0x8] sm:$0xff]  ;;  %v183_v4 = vld [vmem:[#allocation4 + $0x10] sm:$0xff]  ;;  %vm174_vm2 = vcmask 785408   ;;  %s2756_s6 = smov 64   ;;  %s2757_s7 = smov 96  }
  0x15   :  { %v2483_v5 = vpack.c.bf16 %v30_v3, %v29_v2  ;;  %v184_v6 = vld [vmem:[#allocation4 + $0x18] sm:$0xff]  ;;  %v185_v9 = vld [vmem:[#allocation4 + $0x20] sm:$0xff]  ;;  %v186_v10 = vld [vmem:[#allocation4 + $0x28] sm:$0xff]  ;;  %vm193_vm3 = vcmask 261120   ;;  %s2758_s25 = smov [#allocation7]   ;;  %vm2084_vm4 = vcmask 64512  }
  0x16   :  { %v32_v7 = vld [vmem:[%s3119_s0] sm:$0xff]  ;;  %v2797_v8 = vpack.c.bf16 %v184_v6, %v183_v4  ;;  %v33_v11 = vld [vmem:[%s3119_s0 + $0x8] sm:$0xff]  ;;  %v2804_v12 = vpack.c.bf16 %v186_v10, %v185_v9  ;;  %v34_v52 = vld [vmem:[%s3119_s0 + $0x10] sm:$0xff]  ;;  %s2092_s26 = sshll.u32 %s2758_s25, 4  ;;  %s2093_s26 = int_to_ptr.vmem [resolvable:$true] %s2092_s26 }
  0x17   :  { %2264 = vmatprep.mubr.msk.f32.mxu0 %vm44_vm1, %v32_v7  ;;  %2484 = vmatprep.subr.bf16.mxu0 %v2483_v5  ;;  %v2825_v13 = vld [vmem:[%s3121_s2] ss:$0 sm:$0xff]  ;;  %v2832_v18 = vld [vmem:[%s3121_s2 + $0x8] ss:$0 sm:$0xff]  ;;  %v35_v53 = vld [vmem:[%s3119_s0 + $0x18] sm:$0xff]  ;;  %s2724_s27 = scalar_lea.vmem %s2093_s26, 128  ;;  %p2729_p9 = scmp.lt.s32.totalorder %s2093_s26, %s2093_s26 }
  0x18   :  { %2489 = vmatpush3.bf16.msra.mxu1 %v2797_v8  ;;  %2486 = vmatpush3.bf16.msra.mxu0 %v2483_v5  ;;  %v36_v54 = vld [vmem:[%s3119_s0 + $0x20] sm:$0xff]  ;;  %v37_v55 = vld [vmem:[%s3119_s0 + $0x28] sm:$0xff]  ;;  %v38_v56 = vld [vmem:[%s3119_s0 + $0x30] sm:$0xff]  ;;  %p2725_p8 = scmp.ne.s32.totalorder %s2093_s26, %s2724_s27  ;;  %p2730_p10 = scmp.lt.s32.totalorder %s2724_s27, %s2724_s27 }
  0x19   :  { %2490 = vmatprep.subr.bf16.mxu1 %v2753_v0  ;;  %2499 = vmatprep.subr.bf16.mxu0 %v2753_v0  ;;  %v39_v57 = vld [vmem:[%s3119_s0 + $0x38] sm:$0xff] }
  0x1a   :  { %p2731_p11 = por %p2730_p10, %p2729_p9 }
  0x1b   :  { %2265 = vmatmul.mubr.msk.f32.vlgmr.msra.gmra.mrb[0].mxu0 %vm44_vm1, %v33_v11 }
  0x1c   :  { %2492 = vmatpush3.bf16.msra.mxu1 %v2804_v12  ;;  %2501 = vmatpush3.bf16.msra.mxu0 %v2797_v8  ;;  %p2732_p12 = pnand %p2731_p11, %p2725_p8 }
  0x1d   :  { %2493 = vmatprep.subr.bf16.mxu1 %v2753_v0  ;;  %2502 = vmatprep.subr.bf16.mxu0 %v2753_v0 }
  0x1e   :  { %2267 = vmatprep.mubr.msk.f32.mxu0 %vm44_vm1, %v34_v52 }
  0x1f   :  { %2285 = vmatmul.mubr.f32.vlgmr.msra.gmra.mrb[0].mxu1 %v2755_v1  ;;  %2268 = vmatmul.mubr.msk.f32.gmra.mrb[2].mxu0 %vm44_vm1, %v35_v53 }
  0x20   :  { %2495 = vmatpush3.bf16.msra.mxu1 %v2797_v8  ;;  %2295 = vmatprep.mubr.msk.f32.mxu1 %vm2754_vm0, %v2755_v1 }
  0x21   :  { %2496 = vmatprep.subr.bf16.mxu1 %v2753_v0  ;;  %2504 = vmatpush3.bf16.msra.mxu0 %v2804_v12 }
  0x22   :  { %2511 = vmatprep.subr.bf16.mxu0 %v2753_v0  ;;  %2270 = vmatprep.mubr.msk.f32.mxu0 %vm44_vm1, %v36_v54 }
  0x23   :  { %2271 = vmatmul.mubr.msk.f32.gmra.mrb[4].mxu0 %vm44_vm1, %v37_v55 }
  0x24   :  { %2498 = vmatpush3.bf16.msra.mxu1 %v2804_v12  ;;  %2273 = vmatprep.mubr.msk.f32.mxu0 %vm44_vm1, %v38_v56 }
  0x25   :  { %2505 = vmatprep.subr.bf16.mxu1 %v2753_v0 }
  0x27   :  { %2274 = vmatmul.mubr.msk.f32.gmra.mrb[6].mxu0 %vm44_vm1, %v39_v57 }
  0x28   :  { %2306 = vmatprep.mubr.msk.f32.mxu0 %vm2754_vm0, %v2755_v1 }
  0xee   :  { %v2266_v14 = vpop.f32.mrb[0].mxu0 }
  0xef   :  { %v141_v15 = vadd.f32 %v2266_v14, %v2825_v13  ;;  %v135_v16 = vpop.f32.mrb[1].mxu0 }
  0xf0   :  { %v136_v17 = vadd.f32 %v2825_v13, %v135_v16 }
  0xf1   :  { %176 = vst.msk [vmem:[#allocation2 + $0x8] sm:$0xff] %vm174_vm2, %v141_v15 }
  0xf2   :  { %175 = vst.msk [vmem:[#allocation2] sm:$0xff] %vm174_vm2, %v136_v17  ;;  %v263_v19 = vpop.f32.mrb[0].mxu1  ;;  %v2269_v2 = vpop.f32.mrb[2].mxu0 }
  0xf3   :  { %v264_v20 = vadd.f32 %v2832_v18, %v263_v19  ;;  %v2286_v21 = vpop.f32.mrb[1].mxu1  ;;  %v151_v3 = vadd.f32 %v2269_v2, %v2825_v13  ;;  %v145_v4 = vpop.f32.mrb[3].mxu0 }
  0xf4   :  { %v146_v5 = vadd.f32 %v2825_v13, %v145_v4 }
  0xf5   :  { %275 = vrot.lane.b32.xlu0 %v264_v20, %s2756_s6  ;;  %178 = vst.msk [vmem:[#allocation2 + $0x18] sm:$0xff] %vm174_vm2, %v151_v3 }
  0xf6   :  { %177 = vst.msk [vmem:[#allocation2 + $0x10] sm:$0xff] %vm174_vm2, %v146_v5  ;;  %v2272_v6 = vpop.f32.mrb[4].mxu0 }
  0xf7   :  { %v161_v7 = vadd.f32 %v2272_v6, %v2825_v13  ;;  %v155_v9 = vpop.f32.mrb[5].mxu0 }
  0xf8   :  { %v298_v42 = vld [vmem:[#allocation2 + $0x8] sm:$0xff]  ;;  %v156_v10 = vadd.f32 %v2825_v13, %v155_v9 }
  0xf9   :  { %v192_v22 = vld [vmem:[#allocation2] sm:$0xff]  ;;  %180 = vst.msk [vmem:[#allocation2 + $0x28] sm:$0xff] %vm174_vm2, %v161_v7 }
  0xfa   :  { %v267_v23 = vadd.f32 %v264_v20, %v192_v22  ;;  %179 = vst.msk [vmem:[#allocation2 + $0x20] sm:$0xff] %vm174_vm2, %v156_v10  ;;  %v2275_v11 = vpop.f32.mrb[6].mxu0 }
  0xfb   :  { %v171_v14 = vadd.f32 %v2275_v11, %v2825_v13  ;;  %v165_v15 = vpop.f32.mrb[7].mxu0 }
  0xfc   :  { %v2111_v24 = vmul.f32 -1.442695, %v267_v23  ;;  %v166_v16 = vadd.f32 %v2825_v13, %v165_v15 }
  0xfd   :  { %182 = vst.msk [vmem:[#allocation2 + $0x38] sm:$0xff] %vm174_vm2, %v171_v14  ;;  %v402_v21 = vld [vmem:[#allocation2 + $0x10] sm:$0xff] }
  0xfe   :  { %2606 = vpow2.f32 %v2111_v24  ;;  %181 = vst.msk [vmem:[#allocation2 + $0x30] sm:$0xff] %vm174_vm2, %v166_v16 }
 0x108   :  { %v2607_v25 = vpop.eup %2606 }
 0x109   :  { %v271_v26 = vadd.f32 1.0, %v2607_v25 }
 0x10b   :  { %2608 = vrcp.f32 %v271_v26 }
 0x115   :  { %v2609_v27 = vpop.eup %2608 }
 0x116   :  { %v285_v33 = vsub.f32 1.0, %v2609_v27  ;;  %v291_v35 = vmul.f32 0.0, %v2609_v27 }
 0x167   :  { %v276_v28 = vpop.permute.xlu0 %275 }
 0x168   :  { %v278_v29 = vmul.f32 %v2609_v27, %v276_v28 }
 0x16a   :  { %280 = vrot.lane.b32.xlu0 %v278_v29, %s2756_s6 }
 0x1dc   :  { %v281_v30 = vpop.permute.xlu0 %280 }
 0x1dd   :  { %v283_v31 = vadd.f32 %v281_v30, %v192_v22 }
 0x1df   :  { %2610 = vtanh.f32 %v283_v31 }
 0x1e9   :  { %v2611_v32 = vpop.eup %2610 }
 0x1ea   :  { %287 = vrot.lane.b32.xlu1 %v2611_v32, %s2757_s7 }
 0x25c   :  { %v288_v34 = vpop.permute.xlu1 %287 }
 0x25d   :  { %v290_v36 = vmul.f32 %v288_v34, %v285_v33 }
 0x25f   :  { %v292_v37 = vadd.f32 %v291_v35, %v290_v36 }
 0x261   :  { %294 = vrot.lane.b32.xlu1 %v292_v37, %s2757_s7 }
 0x2d3   :  { %v295_v38 = vpop.permute.xlu1 %294 }
 0x2d4   :  { %297 = vst.msk [vmem:[#allocation3] sm:$0xff] %vm193_vm3, %v295_v38  ;;  %2296 = vmatmul.mubr.msk.f32.vlgmr.msra.gmra.mrb[2].mxu1 %vm193_vm3, %v295_v38 }
 0x2d5   :  { %2507 = vmatpush3.bf16.msra.mxu1 %v2797_v8  ;;  %2317 = vmatprep.mubr.msk.f32.mxu1 %vm2754_vm0, %v2755_v1 }
 0x2d6   :  { %2508 = vmatprep.subr.bf16.mxu1 %v2753_v0 }
 0x2d9   :  { %2510 = vmatpush3.bf16.msra.mxu1 %v2804_v12 }
 0x2da   :  { %2517 = vmatprep.subr.bf16.mxu1 %v2753_v0 }
 0x3a7   :  { %v367_v39 = vpop.f32.mrb[2].mxu1 }
 0x3a8   :  { %v368_v40 = vadd.f32 %v2832_v18, %v367_v39  ;;  %v2297_v41 = vpop.f32.mrb[3].mxu1 }
 0x3a9   :  { %v506_v41 = vld [vmem:[#allocation2 + $0x18] sm:$0xff] }
 0x3aa   :  { %379 = vrot.lane.b32.xlu0 %v368_v40, %s2756_s6  ;;  %v371_v43 = vadd.f32 %v368_v40, %v298_v42 }
 0x3ac   :  { %v2113_v44 = vmul.f32 -1.442695, %v371_v43 }
 0x3ae   :  { %2612 = vpow2.f32 %v2113_v44 }
 0x3b8   :  { %v2613_v45 = vpop.eup %2612 }
 0x3b9   :  { %v375_v46 = vadd.f32 1.0, %v2613_v45 }
 0x3bb   :  { %2614 = vrcp.f32 %v375_v46 }
 0x3c5   :  { %v2615_v47 = vpop.eup %2614 }
 0x3c6   :  { %v389_v59 = vsub.f32 1.0, %v2615_v47  ;;  %v395_v61 = vmul.f32 %v2615_v47, %v292_v37 }
 0x41c   :  { %v380_v48 = vpop.permute.xlu0 %379 }
 0x41d   :  { %v382_v49 = vmul.f32 %v2615_v47, %v380_v48 }
 0x41f   :  { %384 = vrot.lane.b32.xlu1 %v382_v49, %s2756_s6 }
 0x491   :  { %v385_v50 = vpop.permute.xlu1 %384 }
 0x492   :  { %v387_v51 = vadd.f32 %v385_v50, %v298_v42 }
 0x494   :  { %2616 = vtanh.f32 %v387_v51 }
 0x49e   :  { %v2617_v58 = vpop.eup %2616 }
 0x49f   :  { %391 = vrot.lane.b32.xlu0 %v2617_v58, %s2757_s7 }
 0x511   :  { %v392_v60 = vpop.permute.xlu0 %391 }
 0x512   :  { %v394_v62 = vmul.f32 %v392_v60, %v389_v59 }
 0x514   :  { %v396_v63 = vadd.f32 %v395_v61, %v394_v62  ;;  %v610_v61 = vld [vmem:[#allocation2 + $0x20] sm:$0xff] }
 0x516   :  { %398 = vrot.lane.b32.xlu1 %v396_v63, %s2757_s7 }
 0x588   :  { %v399_v17 = vpop.permute.xlu1 %398 }
 0x589   :  { %401 = vst.msk [vmem:[#allocation3 + $0x8] sm:$0xff] %vm193_vm3, %v399_v17  ;;  %2307 = vmatmul.mubr.msk.f32.vlgmr.msra.gmra.mrb[8].mxu0 %vm193_vm3, %v399_v17 }
 0x58a   :  { %2513 = vmatpush3.bf16.msra.mxu0 %v2797_v8  ;;  %2328 = vmatprep.mubr.msk.f32.mxu0 %vm2754_vm0, %v2755_v1 }
 0x58b   :  { %2514 = vmatprep.subr.bf16.mxu0 %v2753_v0 }
 0x58e   :  { %2516 = vmatpush3.bf16.msra.mxu0 %v2804_v12 }
 0x58f   :  { %2523 = vmatprep.subr.bf16.mxu0 %v2753_v0 }
 0x65c   :  { %v471_v13 = vpop.f32.mrb[8].mxu0 }
 0x65d   :  { %v472_v19 = vadd.f32 %v2832_v18, %v471_v13  ;;  %v2308_v20 = vpop.f32.mrb[9].mxu0 }
 0x65f   :  { %483 = vrot.lane.b32.xlu0 %v472_v19, %s2756_s6  ;;  %v475_v22 = vadd.f32 %v472_v19, %v402_v21 }
 0x661   :  { %v2115_v23 = vmul.f32 -1.442695, %v475_v22  ;;  %v714_v22 = vld [vmem:[#allocation2 + $0x28] sm:$0xff] }
 0x663   :  { %2618 = vpow2.f32 %v2115_v23 }
 0x66d   :  { %v2619_v24 = vpop.eup %2618 }
 0x66e   :  { %v479_v25 = vadd.f32 1.0, %v2619_v24 }
 0x670   :  { %2620 = vrcp.f32 %v479_v25 }
 0x67a   :  { %v2621_v26 = vpop.eup %2620 }
 0x67b   :  { %v493_v32 = vsub.f32 1.0, %v2621_v26  ;;  %v499_v34 = vmul.f32 %v2621_v26, %v396_v63 }
 0x6d1   :  { %v484_v27 = vpop.permute.xlu0 %483 }
 0x6d2   :  { %v486_v28 = vmul.f32 %v2621_v26, %v484_v27 }
 0x6d4   :  { %488 = vrot.lane.b32.xlu1 %v486_v28, %s2756_s6 }
 0x746   :  { %v489_v29 = vpop.permute.xlu1 %488 }
 0x747   :  { %v491_v30 = vadd.f32 %v489_v29, %v402_v21 }
 0x749   :  { %2622 = vtanh.f32 %v491_v30  ;;  %v1026_v30 = vld [vmem:[#allocation4 + $0x30] sm:$0xff] }
 0x753   :  { %v2623_v31 = vpop.eup %2622 }
 0x754   :  { %495 = vrot.lane.b32.xlu0 %v2623_v31, %s2757_s7  ;;  %v1027_v31 = vld [vmem:[#allocation4 + $0x38] sm:$0xff] }
 0x7c6   :  { %v496_v33 = vpop.permute.xlu0 %495 }
 0x7c7   :  { %v498_v35 = vmul.f32 %v496_v33, %v493_v32  ;;  %v2535_v32 = vpack.c.bf16 %v1027_v31, %v1026_v30  ;;  %v3008_v30 = vld [vmem:[%s3121_s2 + $0x18] ss:$0 sm:$0xff] }
 0x7c9   :  { %v500_v36 = vadd.f32 %v499_v34, %v498_v35 }
 0x7cb   :  { %502 = vrot.lane.b32.xlu1 %v500_v36, %s2757_s7 }
 0x83d   :  { %v503_v37 = vpop.permute.xlu1 %502 }
 0x83e   :  { %505 = vst.msk [vmem:[#allocation3 + $0x10] sm:$0xff] %vm193_vm3, %v503_v37  ;;  %2318 = vmatmul.mubr.msk.f32.vlgmr.msra.gmra.mrb[4].mxu1 %vm193_vm3, %v503_v37 }
 0x83f   :  { %2519 = vmatpush3.bf16.msra.mxu1 %v2797_v8  ;;  %2339 = vmatprep.mubr.msk.f32.mxu1 %vm2754_vm0, %v2755_v1 }
 0x840   :  { %2520 = vmatprep.subr.bf16.mxu1 %v2753_v0 }
 0x843   :  { %2522 = vmatpush3.bf16.msra.mxu1 %v2804_v12 }
 0x844   :  { %2529 = vmatprep.subr.bf16.mxu1 %v2753_v0 }
 0x911   :  { %v575_v38 = vpop.f32.mrb[4].mxu1 }
 0x912   :  { %v576_v39 = vadd.f32 %v2832_v18, %v575_v38  ;;  %v2319_v40 = vpop.f32.mrb[5].mxu1 }
 0x913   :  { %v1029_v40 = vld [vmem:[#allocation4 + $0x48] sm:$0xff] }
 0x914   :  { %587 = vrot.lane.b32.xlu0 %v576_v39, %s2756_s6  ;;  %v579_v42 = vadd.f32 %v576_v39, %v506_v41  ;;  %v1028_v39 = vld [vmem:[#allocation4 + $0x40] sm:$0xff] }
 0x916   :  { %v2117_v43 = vmul.f32 -1.442695, %v579_v42 }
 0x918   :  { %2624 = vpow2.f32 %v2117_v43  ;;  %v1031_v43 = vld [vmem:[#allocation3] sm:$0xff] }
 0x922   :  { %v2625_v44 = vpop.eup %2624 }
 0x923   :  { %v583_v45 = vadd.f32 1.0, %v2625_v44  ;;  %v1032_v44 = vld [vmem:[#allocation3 + $0x8] sm:$0xff] }
 0x925   :  { %2626 = vrcp.f32 %v583_v45  ;;  %v1033_v45 = vld [vmem:[#allocation3 + $0x10] sm:$0xff] }
 0x92f   :  { %v2627_v46 = vpop.eup %2626 }
 0x930   :  { %v597_v52 = vsub.f32 1.0, %v2627_v46  ;;  %v603_v54 = vmul.f32 %v2627_v46, %v500_v36 }
 0x986   :  { %v588_v47 = vpop.permute.xlu0 %587 }
 0x987   :  { %v590_v48 = vmul.f32 %v2627_v46, %v588_v47 }
 0x989   :  { %592 = vrot.lane.b32.xlu1 %v590_v48, %s2756_s6 }
 0x9fb   :  { %v593_v49 = vpop.permute.xlu1 %592 }
 0x9fc   :  { %v595_v50 = vadd.f32 %v593_v49, %v506_v41  ;;  %v2539_v41 = vpack.c.bf16 %v1029_v40, %v1028_v39 }
 0x9fe   :  { %2628 = vtanh.f32 %v595_v50 }
 0xa08   :  { %v2629_v51 = vpop.eup %2628 }
 0xa09   :  { %599 = vrot.lane.b32.xlu0 %v2629_v51, %s2757_s7 }
 0xa7b   :  { %v600_v53 = vpop.permute.xlu0 %599 }
 0xa7c   :  { %v602_v55 = vmul.f32 %v600_v53, %v597_v52  ;;  %v2960_v52 = vld [vmem:[%s3121_s2 + $0x10] ss:$0 sm:$0xff] }
 0xa7e   :  { %v604_v56 = vadd.f32 %v603_v54, %v602_v55 }
 0xa80   :  { %606 = vrot.lane.b32.xlu1 %v604_v56, %s2757_s7 }
 0xaf2   :  { %v607_v57 = vpop.permute.xlu1 %606 }
 0xaf3   :  { %609 = vst.msk [vmem:[#allocation3 + $0x18] sm:$0xff] %vm193_vm3, %v607_v57  ;;  %2329 = vmatmul.mubr.msk.f32.vlgmr.msra.gmra.mrb[10].mxu0 %vm193_vm3, %v607_v57 }
 0xaf4   :  { %2525 = vmatpush3.bf16.msra.mxu0 %v2797_v8  ;;  %2350 = vmatprep.mubr.msk.f32.mxu0 %vm2754_vm0, %v2755_v1 }
 0xaf5   :  { %2526 = vmatprep.subr.bf16.mxu0 %v2753_v0 }
 0xaf8   :  { %2528 = vmatpush3.bf16.msra.mxu0 %v2804_v12 }
 0xaf9   :  { %2536 = vmatprep.subr.bf16.mxu0 %v2535_v32 }
 0xafa   :  { %v1034_v46 = vld [vmem:[#allocation3 + $0x18] sm:$0xff] }
 0xbc6   :  { %v679_v58 = vpop.f32.mrb[10].mxu0 }
 0xbc7   :  { %v680_v59 = vadd.f32 %v2832_v18, %v679_v58  ;;  %v2330_v60 = vpop.f32.mrb[11].mxu0 }
 0xbc9   :  { %691 = vrot.lane.b32.xlu0 %v680_v59, %s2756_s6  ;;  %v683_v62 = vadd.f32 %v680_v59, %v610_v61 }
 0xbcb   :  { %v2119_v63 = vmul.f32 -1.442695, %v683_v62 }
 0xbcd   :  { %2630 = vpow2.f32 %v2119_v63 }
 0xbd7   :  { %v2631_v2 = vpop.eup %2630 }
 0xbd8   :  { %v687_v3 = vadd.f32 1.0, %v2631_v2 }
 0xbda   :  { %2632 = vrcp.f32 %v687_v3  ;;  %v818_v3 = vld [vmem:[#allocation2 + $0x30] sm:$0xff] }
 0xbe4   :  { %v2633_v4 = vpop.eup %2632 }
 0xbe5   :  { %v701_v11 = vsub.f32 1.0, %v2633_v4  ;;  %v707_v15 = vmul.f32 %v2633_v4, %v604_v56 }
 0xc3b   :  { %v692_v5 = vpop.permute.xlu0 %691 }
 0xc3c   :  { %v694_v6 = vmul.f32 %v2633_v4, %v692_v5 }
 0xc3e   :  { %696 = vrot.lane.b32.xlu1 %v694_v6, %s2756_s6 }
 0xcb0   :  { %v697_v7 = vpop.permute.xlu1 %696 }
 0xcb1   :  { %v699_v9 = vadd.f32 %v697_v7, %v610_v61 }
 0xcb3   :  { %2634 = vtanh.f32 %v699_v9 }
 0xcbd   :  { %v2635_v10 = vpop.eup %2634 }
 0xcbe   :  { %703 = vrot.lane.b32.xlu0 %v2635_v10, %s2757_s7 }
 0xd30   :  { %v704_v14 = vpop.permute.xlu0 %703 }
 0xd31   :  { %v706_v16 = vmul.f32 %v704_v14, %v701_v11 }
 0xd33   :  { %v708_v17 = vadd.f32 %v707_v15, %v706_v16 }
 0xd35   :  { %710 = vrot.lane.b32.xlu1 %v708_v17, %s2757_s7 }
 0xda7   :  { %v711_v13 = vpop.permute.xlu1 %710 }
 0xda8   :  { %713 = vst.msk [vmem:[#allocation3 + $0x20] sm:$0xff] %vm193_vm3, %v711_v13  ;;  %2340 = vmatmul.mubr.msk.f32.vlgmr.msra.gmra.mrb[6].mxu1 %vm193_vm3, %v711_v13  ;;  %v1181_v13 = vld [vmem:[#allocation4 + $0x58] sm:$0xff] }
 0xda9   :  { %2531 = vmatpush3.bf16.msra.mxu1 %v2797_v8  ;;  %2361 = vmatprep.mubr.msk.f32.mxu1 %vm2754_vm0, %v2755_v1 }
 0xdaa   :  { %2532 = vmatprep.subr.bf16.mxu1 %v2753_v0 }
 0xdad   :  { %2534 = vmatpush3.bf16.msra.mxu1 %v2804_v12 }
 0xdae   :  { %2543 = vmatprep.subr.bf16.mxu1 %v2753_v0 }
 0xdaf   :  { %v1035_v47 = vld [vmem:[#allocation3 + $0x20] sm:$0xff] }
 0xe7b   :  { %v783_v19 = vpop.f32.mrb[6].mxu1 }
 0xe7c   :  { %v784_v20 = vadd.f32 %v2832_v18, %v783_v19  ;;  %v2341_v21 = vpop.f32.mrb[7].mxu1 }
 0xe7d   :  { %v1183_v21 = vld [vmem:[#allocation4 + $0x68] sm:$0xff] }
 0xe7e   :  { %795 = vrot.lane.b32.xlu0 %v784_v20, %s2756_s6  ;;  %v787_v23 = vadd.f32 %v784_v20, %v714_v22  ;;  %v1182_v20 = vld [vmem:[#allocation4 + $0x60] sm:$0xff] }
 0xe80   :  { %v2121_v24 = vmul.f32 -1.442695, %v787_v23 }
 0xe82   :  { %2636 = vpow2.f32 %v2121_v24 }
 0xe8c   :  { %v2637_v8 = vpop.eup %2636 }
 0xe8d   :  { %v791_v25 = vadd.f32 1.0, %v2637_v8 }
 0xe8f   :  { %2638 = vrcp.f32 %v791_v25 }
 0xe99   :  { %v2639_v26 = vpop.eup %2638 }
 0xe9a   :  { %v805_v34 = vsub.f32 1.0, %v2639_v26  ;;  %v811_v36 = vmul.f32 %v2639_v26, %v708_v17  ;;  %v1180_v17 = vld [vmem:[#allocation4 + $0x50] sm:$0xff] }
 0xe9b   :  { %v2976_v19 = vpack.c.bf16 %v1181_v13, %v1180_v17 }
 0xef0   :  { %v796_v27 = vpop.permute.xlu0 %795 }
 0xef1   :  { %v798_v28 = vmul.f32 %v2639_v26, %v796_v27 }
 0xef3   :  { %800 = vrot.lane.b32.xlu1 %v798_v28, %s2756_s6 }
 0xf65   :  { %v801_v12 = vpop.permute.xlu1 %800 }
 0xf66   :  { %v803_v29 = vadd.f32 %v801_v12, %v714_v22  ;;  %v2980_v22 = vpack.c.bf16 %v1183_v21, %v1182_v20 }
 0xf68   :  { %2640 = vtanh.f32 %v803_v29 }
 0xf72   :  { %v2641_v33 = vpop.eup %2640 }
 0xf73   :  { %807 = vrot.lane.b32.xlu0 %v2641_v33, %s2757_s7 }
 0xfe5   :  { %v808_v35 = vpop.permute.xlu0 %807 }
 0xfe6   :  { %v810_v37 = vmul.f32 %v808_v35, %v805_v34 }
 0xfe8   :  { %v2942_v38 = vadd.f32 %v811_v36, %v810_v37 }
 0xfea   :  { %814 = vrot.lane.b32.xlu1 %v2942_v38, %s2757_s7 }
0x105c   :  { %v815_v42 = vpop.permute.xlu1 %814 }
0x105d   :  { %817 = vst.msk [vmem:[#allocation3 + $0x28] sm:$0xff] %vm193_vm3, %v815_v42  ;;  %2351 = vmatmul.mubr.msk.f32.vlgmr.msra.gmra.mrb[12].mxu0 %vm193_vm3, %v815_v42 }
0x105e   :  { %2538 = vmatpush3.bf16.msra.mxu0 %v2535_v32  ;;  %2372 = vmatprep.mubr.msk.f32.mxu0 %vm193_vm3, %v1031_v43 }
0x105f   :  { %2540 = vmatprep.subr.bf16.mxu0 %v2539_v41 }
0x1062   :  { %2542 = vmatpush3.bf16.msra.mxu0 %v2539_v41 }
0x1063   :  { %2555 = vmatprep.subr.bf16.mxu0 %v2753_v0 }
0x1064   :  { %v1036_v48 = vld [vmem:[#allocation3 + $0x28] sm:$0xff] }
0x1065   :  { %2373 = vmatmul.mubr.msk.f32.vlgmr.msra.gmra.mrb[14].mxu0 %vm193_vm3, %v1032_v44 }
0x1066   :  { %2375 = vmatprep.mubr.msk.f32.mxu0 %vm193_vm3, %v1033_v45  ;;  %2557 = vmatpush3.bf16.msra.mxu0 %v2976_v19 }
0x1067   :  { %2558 = vmatprep.subr.bf16.mxu0 %v2753_v0 }
0x1069   :  { %2376 = vmatmul.mubr.msk.f32.gmra.mrb[16].mxu0 %vm193_vm3, %v1034_v46  ;;  %v922_v46 = vld [vmem:[#allocation2 + $0x38] sm:$0xff] }
0x106a   :  { %2378 = vmatprep.mubr.msk.f32.mxu0 %vm193_vm3, %v1035_v47  ;;  %2560 = vmatpush3.bf16.msra.mxu0 %v2980_v22 }
0x106b   :  { %2567 = vmatprep.subr.bf16.mxu0 %v2753_v0 }
0x106d   :  { %2379 = vmatmul.mubr.msk.f32.gmra.mrb[18].mxu0 %vm193_vm3, %v1036_v48 }
0x1130   :  { %v887_v49 = vpop.f32.mrb[12].mxu0 }
0x1131   :  { %v888_v50 = vadd.f32 %v2832_v18, %v887_v49  ;;  %v2352_v51 = vpop.f32.mrb[13].mxu0 }
0x1133   :  { %899 = vrot.lane.b32.xlu0 %v888_v50, %s2756_s6  ;;  %v891_v4 = vadd.f32 %v888_v50, %v818_v3 }
0x1135   :  { %v2123_v5 = vmul.f32 -1.442695, %v891_v4 }
0x1137   :  { %2642 = vpow2.f32 %v2123_v5 }
0x1138   :  { %v2374_v53 = vpop.f32.mrb[14].mxu0 }
0x1139   :  { %v1139_v54 = vadd.f32 %v2374_v53, %v2960_v52  ;;  %v1133_v55 = vpop.f32.mrb[15].mxu0 }
0x113a   :  { %v1134_v56 = vadd.f32 %v2960_v52, %v1133_v55 }
0x113b   :  { %1173 = vst.msk [vmem:[#allocation2 + $0x8] sm:$0xff] %vm174_vm2, %v1139_v54 }
0x113c   :  { %1172 = vst.msk [vmem:[#allocation2] sm:$0xff] %vm174_vm2, %v1134_v56  ;;  %v2377_v57 = vpop.f32.mrb[16].mxu0 }
0x113d   :  { %v1149_v58 = vadd.f32 %v2377_v57, %v2960_v52  ;;  %v1143_v59 = vpop.f32.mrb[17].mxu0 }
0x113e   :  { %v1144_v60 = vadd.f32 %v2960_v52, %v1143_v59 }
0x113f   :  { %1175 = vst.msk [vmem:[#allocation2 + $0x18] sm:$0xff] %vm174_vm2, %v1149_v58 }
0x1140   :  { %1174 = vst.msk [vmem:[#allocation2 + $0x10] sm:$0xff] %vm174_vm2, %v1144_v60  ;;  %v2380_v61 = vpop.f32.mrb[18].mxu0 }
0x1141   :  { %v1159_v62 = vadd.f32 %v2380_v61, %v2960_v52  ;;  %v1153_v63 = vpop.f32.mrb[19].mxu0  ;;  %v2643_v6 = vpop.eup %2642 }
0x1142   :  { %v1154_v2 = vadd.f32 %v2960_v52, %v1153_v63  ;;  %v895_v7 = vadd.f32 1.0, %v2643_v6 }
0x1143   :  { %1177 = vst.msk [vmem:[#allocation2 + $0x28] sm:$0xff] %vm174_vm2, %v1159_v62  ;;  %v1189_v34 = vld [vmem:[#allocation2] sm:$0xff] }
0x1144   :  { %1176 = vst.msk [vmem:[#allocation2 + $0x20] sm:$0xff] %vm174_vm2, %v1154_v2  ;;  %2644 = vrcp.f32 %v895_v7 }
0x114e   :  { %v2645_v9 = vpop.eup %2644 }
0x114f   :  { %v909_v23 = vsub.f32 1.0, %v2645_v9  ;;  %v915_v8 = vmul.f32 %v2645_v9, %v2942_v38 }
0x11a5   :  { %v900_v10 = vpop.permute.xlu0 %899 }
0x11a6   :  { %v902_v11 = vmul.f32 %v2645_v9, %v900_v10 }
0x11a8   :  { %904 = vrot.lane.b32.xlu1 %v902_v11, %s2756_s6 }
0x121a   :  { %v905_v14 = vpop.permute.xlu1 %904 }
0x121b   :  { %v907_v15 = vadd.f32 %v905_v14, %v818_v3  ;;  %v1286_v14 = vld [vmem:[#allocation2 + $0x8] sm:$0xff] }
0x121d   :  { %2646 = vtanh.f32 %v907_v15 }
0x1227   :  { %v2647_v16 = vpop.eup %2646 }
0x1228   :  { %911 = vrot.lane.b32.xlu0 %v2647_v16, %s2757_s7 }
0x129a   :  { %v912_v24 = vpop.permute.xlu0 %911 }
0x129b   :  { %v914_v25 = vmul.f32 %v912_v24, %v909_v23 }
0x129d   :  { %v2985_v26 = vadd.f32 %v915_v8, %v914_v25 }
0x129f   :  { %918 = vrot.lane.b32.xlu1 %v2985_v26, %s2757_s7 }
0x1311   :  { %v919_v27 = vpop.permute.xlu1 %918 }
0x1312   :  { %921 = vst.msk [vmem:[#allocation3 + $0x30] sm:$0xff] %vm193_vm3, %v919_v27  ;;  %2362 = vmatmul.mubr.msk.f32.vlgmr.msra.gmra.mrb[8].mxu1 %vm193_vm3, %v919_v27 }
0x1313   :  { %2545 = vmatpush3.bf16.msra.mxu1 %v2976_v19  ;;  %2392 = vmatprep.mubr.msk.f32.mxu1 %vm2754_vm0, %v2755_v1 }
0x1314   :  { %2546 = vmatprep.subr.bf16.mxu1 %v2753_v0 }
0x1317   :  { %2548 = vmatpush3.bf16.msra.mxu1 %v2980_v22 }
0x1318   :  { %2549 = vmatprep.subr.bf16.mxu1 %v2753_v0 }
0x1319   :  { %v1037_v28 = vld [vmem:[#allocation3 + $0x30] sm:$0xff] }
0x131a   :  { %2393 = vmatmul.mubr.f32.vlgmr.msra.gmra.mrb[10].mxu1 %v2755_v1  ;;  %2381 = vmatprep.mubr.msk.f32.mxu0 %vm193_vm3, %v1037_v28 }
0x131b   :  { %2551 = vmatpush3.bf16.msra.mxu1 %v2976_v19  ;;  %2403 = vmatprep.mubr.msk.f32.mxu1 %vm2754_vm0, %v2755_v1 }
0x131c   :  { %2552 = vmatprep.subr.bf16.mxu1 %v2753_v0 }
0x131f   :  { %2554 = vmatpush3.bf16.msra.mxu1 %v2980_v22 }
0x1320   :  { %2561 = vmatprep.subr.bf16.mxu1 %v2753_v0 }
0x13e5   :  { %v991_v12 = vpop.f32.mrb[8].mxu1 }
0x13e6   :  { %v2363_v29 = vpop.f32.mrb[9].mxu1  ;;  %v992_v45 = vadd.f32 %v2832_v18, %v991_v12 }
0x13e8   :  { %v995_v47 = vadd.f32 %v992_v45, %v922_v46 }
0x13ea   :  { %v2125_v48 = vmul.f32 -1.442695, %v995_v47 }
0x13ed   :  { %v1256_v31 = vpop.f32.mrb[10].mxu1 }
0x13ee   :  { %v1257_v32 = vadd.f32 %v3008_v30, %v1256_v31  ;;  %v2394_v33 = vpop.f32.mrb[11].mxu1 }
0x13f0   :  { %1268 = vrot.lane.b32.xlu0 %v1257_v32, %s2756_s6  ;;  %v1260_v35 = vadd.f32 %v1257_v32, %v1189_v34 }
0x13f2   :  { %v2136_v36 = vmul.f32 -1.442695, %v1260_v35 }
0x13f4   :  { %2648 = vpow2.f32 %v2136_v36 }
0x13fe   :  { %v2649_v37 = vpop.eup %2648 }
0x13ff   :  { %v1264_v38 = vadd.f32 1.0, %v2649_v37 }
0x1401   :  { %2650 = vrcp.f32 %v1264_v38  ;;  %v1388_v38 = vld [vmem:[#allocation2 + $0x10] sm:$0xff] }
0x140b   :  { %v2651_v39 = vpop.eup %2650 }
0x140c   :  { %v1278_v51 = vsub.f32 1.0, %v2651_v39  ;;  %v1284_v54 = vmul.f32 0.0, %v2651_v39 }
0x1462   :  { %v1269_v40 = vpop.permute.xlu0 %1268 }
0x1463   :  { %v1271_v41 = vmul.f32 %v2651_v39, %v1269_v40 }
0x1465   :  { %1273 = vrot.lane.b32.xlu1 %v1271_v41, %s2756_s6 }
0x14d7   :  { %v1274_v42 = vpop.permute.xlu1 %1273 }
0x14d8   :  { %v1276_v43 = vadd.f32 %v1274_v42, %v1189_v34 }
0x14da   :  { %2652 = vtanh.f32 %v1276_v43 }
0x14db   :  { %2654 = vpow2.f32 %v2125_v48 }
0x14e4   :  { %v2653_v44 = vpop.eup %2652 }
0x14e5   :  { %1280 = vrot.lane.b32.xlu0 %v2653_v44, %s2757_s7  ;;  %v2655_v49 = vpop.eup %2654 }
0x14e6   :  { %v999_v50 = vadd.f32 1.0, %v2655_v49 }
0x14e8   :  { %2656 = vrcp.f32 %v999_v50 }
0x14e9   :  { %1003 = vrot.lane.b32.xlu0 %v992_v45, %s2756_s6 }
0x14f2   :  { %v2657_v57 = vpop.eup %2656 }
0x14f3   :  { %v1013_v63 = vsub.f32 1.0, %v2657_v57  ;;  %v1019_v3 = vmul.f32 %v2657_v57, %v2985_v26 }
0x1557   :  { %v1281_v53 = vpop.permute.xlu0 %1280 }
0x1558   :  { %v1283_v55 = vmul.f32 %v1281_v53, %v1278_v51 }
0x155a   :  { %v1285_v56 = vadd.f32 %v1284_v54, %v1283_v55 }
0x155b   :  { %v1004_v58 = vpop.permute.xlu0 %1003 }
0x155c   :  { %v1006_v59 = vmul.f32 %v2657_v57, %v1004_v58  ;;  %1288 = vrot.lane.b32.xlu1 %v1285_v56, %s2757_s7 }
0x155e   :  { %1008 = vrot.lane.b32.xlu0 %v1006_v59, %s2756_s6  ;;  %v1490_v59 = vld [vmem:[#allocation2 + $0x18] sm:$0xff] }
0x15ce   :  { %v1289_v18 = vpop.permute.xlu1 %1288 }
0x15cf   :  { %2404 = vmatmul.mubr.msk.f32.vlgmr.msra.gmra.mrb[12].mxu1 %vm193_vm3, %v1289_v18 }
0x15d0   :  { %v1009_v60 = vpop.permute.xlu0 %1008  ;;  %2563 = vmatpush3.bf16.msra.mxu1 %v2976_v19  ;;  %2425 = vmatprep.mubr.msk.f32.mxu1 %vm2754_vm0, %v2755_v1 }
0x15d1   :  { %v1011_v61 = vadd.f32 %v1009_v60, %v922_v46  ;;  %2564 = vmatprep.subr.bf16.mxu1 %v2753_v0 }
0x15d3   :  { %2658 = vtanh.f32 %v1011_v61 }
0x15d4   :  { %2566 = vmatpush3.bf16.msra.mxu1 %v2980_v22 }
0x15d5   :  { %2573 = vmatprep.subr.bf16.mxu1 %v2753_v0 }
0x15dd   :  { %v2659_v62 = vpop.eup %2658 }
0x15de   :  { %1015 = vrot.lane.b32.xlu0 %v2659_v62, %s2757_s7 }
0x1650   :  { %v1016_v2 = vpop.permute.xlu0 %1015 }
0x1651   :  { %v1018_v4 = vmul.f32 %v1016_v2, %v1013_v63 }
0x1653   :  { %v1020_v5 = vadd.f32 %v1019_v3, %v1018_v4 }
0x1655   :  { %1022 = vrot.lane.b32.xlu0 %v1020_v5, %s2757_s7 }
0x16a2   :  { %v1358_v6 = vpop.f32.mrb[12].mxu1 }
0x16a3   :  { %v1359_v7 = vadd.f32 %v3008_v30, %v1358_v6  ;;  %v2405_v9 = vpop.f32.mrb[13].mxu1 }
0x16a5   :  { %1370 = vrot.lane.b32.xlu1 %v1359_v7, %s2756_s6  ;;  %v1362_v15 = vadd.f32 %v1359_v7, %v1286_v14 }
0x16a7   :  { %v2138_v16 = vmul.f32 -1.442695, %v1362_v15 }
0x16a9   :  { %2660 = vpow2.f32 %v2138_v16 }
0x16b3   :  { %v2661_v17 = vpop.eup %2660 }
0x16b4   :  { %v1366_v13 = vadd.f32 1.0, %v2661_v17 }
0x16b6   :  { %2662 = vrcp.f32 %v1366_v13 }
0x16c0   :  { %v2663_v20 = vpop.eup %2662 }
0x16c1   :  { %v1380_v29 = vsub.f32 1.0, %v2663_v20  ;;  %v1386_v32 = vmul.f32 %v2663_v20, %v1285_v56 }
0x16c7   :  { %v1023_v10 = vpop.permute.xlu0 %1022 }
0x16c8   :  { %1025 = vst.msk [vmem:[#allocation3 + $0x38] sm:$0xff] %vm193_vm3, %v1023_v10 }
0x16cf   :  { %v1038_v11 = vld [vmem:[#allocation3 + $0x38] sm:$0xff] }
0x16d0   :  { %2382 = vmatmul.mubr.msk.f32.gmra.mrb[20].mxu0 %vm193_vm3, %v1038_v11 }
0x16d1   :  { %2414 = vmatprep.mubr.msk.f32.mxu0 %vm2754_vm0, %v2755_v1 }
0x1717   :  { %v1371_v21 = vpop.permute.xlu1 %1370 }
0x1718   :  { %v1373_v23 = vmul.f32 %v2663_v20, %v1371_v21  ;;  %v1592_v20 = vld [vmem:[#allocation2 + $0x20] sm:$0xff] }
0x171a   :  { %1375 = vrot.lane.b32.xlu1 %v1373_v23, %s2756_s6 }
0x178c   :  { %v1376_v24 = vpop.permute.xlu1 %1375 }
0x178d   :  { %v1378_v8 = vadd.f32 %v1376_v24, %v1286_v14 }
0x178f   :  { %2664 = vtanh.f32 %v1378_v8 }
0x1799   :  { %v2665_v25 = vpop.eup %2664 }
0x179a   :  { %1382 = vrot.lane.b32.xlu1 %v2665_v25, %s2757_s7 }
0x17a3   :  { %v2383_v26 = vpop.f32.mrb[20].mxu0 }
0x17a4   :  { %v1169_v27 = vadd.f32 %v2383_v26, %v2960_v52  ;;  %v1163_v28 = vpop.f32.mrb[21].mxu0 }
0x17a5   :  { %v1164_v12 = vadd.f32 %v2960_v52, %v1163_v28 }
0x17a6   :  { %1179 = vst.msk [vmem:[#allocation2 + $0x38] sm:$0xff] %vm174_vm2, %v1169_v27 }
0x17a7   :  { %1178 = vst.msk [vmem:[#allocation2 + $0x30] sm:$0xff] %vm174_vm2, %v1164_v12 }
0x180c   :  { %v1383_v31 = vpop.permute.xlu1 %1382 }
0x180d   :  { %v1385_v33 = vmul.f32 %v1383_v31, %v1380_v29 }
0x180f   :  { %v1387_v34 = vadd.f32 %v1386_v32, %v1385_v33 }
0x1811   :  { %1390 = vrot.lane.b32.xlu1 %v1387_v34, %s2757_s7 }
0x1883   :  { %v1391_v35 = vpop.permute.xlu1 %1390 }
0x1884   :  { %2415 = vmatmul.mubr.msk.f32.vlgmr.msra.gmra.mrb[22].mxu0 %vm193_vm3, %v1391_v35 }
0x1885   :  { %2569 = vmatpush3.bf16.msra.mxu0 %v2976_v19  ;;  %2436 = vmatprep.mubr.msk.f32.mxu0 %vm2754_vm0, %v2755_v1 }
0x1886   :  { %2570 = vmatprep.subr.bf16.mxu0 %v2753_v0 }
0x1889   :  { %2572 = vmatpush3.bf16.msra.mxu0 %v2980_v22 }
0x188a   :  { %2579 = vmatprep.subr.bf16.mxu0 %v2753_v0 }
0x1957   :  { %v1460_v52 = vpop.f32.mrb[22].mxu0 }
0x1958   :  { %v1461_v36 = vadd.f32 %v3008_v30, %v1460_v52  ;;  %v2416_v37 = vpop.f32.mrb[23].mxu0 }
0x195a   :  { %1472 = vrot.lane.b32.xlu0 %v1461_v36, %s2756_s6  ;;  %v1464_v39 = vadd.f32 %v1461_v36, %v1388_v38 }
0x195c   :  { %v2140_v40 = vmul.f32 -1.442695, %v1464_v39  ;;  %v1694_v39 = vld [vmem:[#allocation2 + $0x28] sm:$0xff] }
0x195e   :  { %2666 = vpow2.f32 %v2140_v40 }
0x1968   :  { %v2667_v41 = vpop.eup %2666 }
0x1969   :  { %v1468_v42 = vadd.f32 1.0, %v2667_v41 }
0x196b   :  { %2668 = vrcp.f32 %v1468_v42 }
0x1975   :  { %v2669_v43 = vpop.eup %2668 }
0x1976   :  { %v1482_v49 = vsub.f32 1.0, %v2669_v43  ;;  %v1488_v51 = vmul.f32 %v2669_v43, %v1387_v34 }
0x19cc   :  { %v1473_v44 = vpop.permute.xlu0 %1472 }
0x19cd   :  { %v1475_v45 = vmul.f32 %v2669_v43, %v1473_v44 }
0x19cf   :  { %1477 = vrot.lane.b32.xlu1 %v1475_v45, %s2756_s6 }
0x1a41   :  { %v1478_v46 = vpop.permute.xlu1 %1477 }
0x1a42   :  { %v1480_v47 = vadd.f32 %v1478_v46, %v1388_v38 }
0x1a44   :  { %2670 = vtanh.f32 %v1480_v47 }
0x1a4e   :  { %v2671_v48 = vpop.eup %2670 }
0x1a4f   :  { %1484 = vrot.lane.b32.xlu0 %v2671_v48, %s2757_s7 }
0x1ac1   :  { %v1485_v50 = vpop.permute.xlu0 %1484 }
0x1ac2   :  { %v1487_v53 = vmul.f32 %v1485_v50, %v1482_v49 }
0x1ac4   :  { %v1489_v54 = vadd.f32 %v1488_v51, %v1487_v53 }
0x1ac6   :  { %1492 = vrot.lane.b32.xlu1 %v1489_v54, %s2757_s7 }
0x1b38   :  { %v1493_v55 = vpop.permute.xlu1 %1492 }
0x1b39   :  { %2426 = vmatmul.mubr.msk.f32.vlgmr.msra.gmra.mrb[14].mxu1 %vm193_vm3, %v1493_v55 }
0x1b3a   :  { %2575 = vmatpush3.bf16.msra.mxu1 %v2976_v19  ;;  %2447 = vmatprep.mubr.msk.f32.mxu1 %vm2754_vm0, %v2755_v1 }
0x1b3b   :  { %2576 = vmatprep.subr.bf16.mxu1 %v2753_v0 }
0x1b3e   :  { %2578 = vmatpush3.bf16.msra.mxu1 %v2980_v22 }
0x1b3f   :  { %2585 = vmatprep.subr.bf16.mxu1 %v2753_v0 }
0x1c0c   :  { %v1562_v56 = vpop.f32.mrb[14].mxu1 }
0x1c0d   :  { %v1563_v57 = vadd.f32 %v3008_v30, %v1562_v56  ;;  %v2427_v58 = vpop.f32.mrb[15].mxu1 }
0x1c0e   :  { %v1796_v58 = vld [vmem:[#allocation2 + $0x30] sm:$0xff] }
0x1c0f   :  { %1574 = vrot.lane.b32.xlu0 %v1563_v57, %s2756_s6  ;;  %v1566_v18 = vadd.f32 %v1563_v57, %v1490_v59 }
0x1c11   :  { %v2142_v60 = vmul.f32 -1.442695, %v1566_v18 }
0x1c13   :  { %2672 = vpow2.f32 %v2142_v60 }
0x1c1d   :  { %v2673_v61 = vpop.eup %2672 }
0x1c1e   :  { %v1570_v62 = vadd.f32 1.0, %v2673_v61 }
0x1c20   :  { %2674 = vrcp.f32 %v1570_v62 }
0x1c2a   :  { %v2675_v63 = vpop.eup %2674 }
0x1c2b   :  { %v1584_v7 = vsub.f32 1.0, %v2675_v63  ;;  %v1590_v10 = vmul.f32 %v2675_v63, %v1489_v54 }
0x1c81   :  { %v1575_v2 = vpop.permute.xlu0 %1574 }
0x1c82   :  { %v1577_v3 = vmul.f32 %v2675_v63, %v1575_v2 }
0x1c84   :  { %1579 = vrot.lane.b32.xlu1 %v1577_v3, %s2756_s6 }
0x1cf6   :  { %v1580_v4 = vpop.permute.xlu1 %1579 }
0x1cf7   :  { %v1582_v5 = vadd.f32 %v1580_v4, %v1490_v59 }
0x1cf9   :  { %2676 = vtanh.f32 %v1582_v5 }
0x1d03   :  { %v2677_v6 = vpop.eup %2676 }
0x1d04   :  { %1586 = vrot.lane.b32.xlu0 %v2677_v6, %s2757_s7 }
0x1d76   :  { %v1587_v9 = vpop.permute.xlu0 %1586 }
0x1d77   :  { %v1589_v11 = vmul.f32 %v1587_v9, %v1584_v7 }
0x1d79   :  { %v1591_v14 = vadd.f32 %v1590_v10, %v1589_v11 }
0x1d7b   :  { %1594 = vrot.lane.b32.xlu1 %v1591_v14, %s2757_s7 }
0x1ded   :  { %v1595_v15 = vpop.permute.xlu1 %1594 }
0x1dee   :  { %2437 = vmatmul.mubr.msk.f32.vlgmr.msra.gmra.mrb[24].mxu0 %vm193_vm3, %v1595_v15 }
0x1def   :  { %2581 = vmatpush3.bf16.msra.mxu0 %v2976_v19  ;;  %2458 = vmatprep.mubr.msk.f32.mxu0 %vm2754_vm0, %v2755_v1 }
0x1df0   :  { %2582 = vmatprep.subr.bf16.mxu0 %v2753_v0 }
0x1df3   :  { %2584 = vmatpush3.bf16.msra.mxu0 %v2980_v22 }
0x1df4   :  { %2591 = vmatprep.subr.bf16.mxu0 %v2753_v0 }
0x1ec1   :  { %v1664_v16 = vpop.f32.mrb[24].mxu0 }
0x1ec2   :  { %v1665_v17 = vadd.f32 %v3008_v30, %v1664_v16  ;;  %v2438_v13 = vpop.f32.mrb[25].mxu0 }
0x1ec4   :  { %1676 = vrot.lane.b32.xlu0 %v1665_v17, %s2756_s6  ;;  %v1668_v21 = vadd.f32 %v1665_v17, %v1592_v20  ;;  %v1898_v17 = vld [vmem:[#allocation2 + $0x38] sm:$0xff] }
0x1ec6   :  { %v2144_v23 = vmul.f32 -1.442695, %v1668_v21 }
0x1ec8   :  { %2678 = vpow2.f32 %v2144_v23 }
0x1ed2   :  { %v2679_v24 = vpop.eup %2678 }
0x1ed3   :  { %v1672_v8 = vadd.f32 1.0, %v2679_v24 }
0x1ed5   :  { %2680 = vrcp.f32 %v1672_v8 }
0x1edf   :  { %v2681_v25 = vpop.eup %2680 }
0x1ee0   :  { %v1686_v31 = vsub.f32 1.0, %v2681_v25  ;;  %v1692_v33 = vmul.f32 %v2681_v25, %v1591_v14 }
0x1f36   :  { %v1677_v26 = vpop.permute.xlu0 %1676 }
0x1f37   :  { %v1679_v27 = vmul.f32 %v2681_v25, %v1677_v26 }
0x1f39   :  { %1681 = vrot.lane.b32.xlu1 %v1679_v27, %s2756_s6 }
0x1fab   :  { %v1682_v28 = vpop.permute.xlu1 %1681 }
0x1fac   :  { %v1684_v12 = vadd.f32 %v1682_v28, %v1592_v20  ;;  %v2000_v28 = vld [vmem:[#allocation4 + $0x70] sm:$0xff] }
0x1fae   :  { %2682 = vtanh.f32 %v1684_v12  ;;  %v2002_v12 = vld [vmem:[#allocation4 + $0x80] sm:$0xff] }
0x1fb8   :  { %v2683_v29 = vpop.eup %2682 }
0x1fb9   :  { %1688 = vrot.lane.b32.xlu0 %v2683_v29, %s2757_s7 }
0x202b   :  { %v1689_v32 = vpop.permute.xlu0 %1688 }
0x202c   :  { %v1691_v34 = vmul.f32 %v1689_v32, %v1686_v31  ;;  %v2003_v31 = vld [vmem:[#allocation4 + $0x88] sm:$0xff] }
0x202d   :  { %v2595_v32 = vpack.c.bf16 %v2003_v31, %v2002_v12 }
0x202e   :  { %v1693_v35 = vadd.f32 %v1692_v33, %v1691_v34 }
0x2030   :  { %1696 = vrot.lane.b32.xlu1 %v1693_v35, %s2757_s7 }
0x20a2   :  { %v1697_v52 = vpop.permute.xlu1 %1696 }
0x20a3   :  { %2448 = vmatmul.mubr.msk.f32.vlgmr.msra.gmra.mrb[16].mxu1 %vm193_vm3, %v1697_v52 }
0x20a4   :  { %2587 = vmatpush3.bf16.msra.mxu1 %v2976_v19  ;;  %2469 = vmatprep.mubr.msk.f32.mxu1 %vm2754_vm0, %v2755_v1 }
0x20a5   :  { %2588 = vmatprep.subr.bf16.mxu1 %v2753_v0 }
0x20a8   :  { %2590 = vmatpush3.bf16.msra.mxu1 %v2980_v22 }
0x2176   :  { %v1766_v36 = vpop.f32.mrb[16].mxu1 }
0x2177   :  { %v1767_v37 = vadd.f32 %v3008_v30, %v1766_v36  ;;  %v2449_v38 = vpop.f32.mrb[17].mxu1 }
0x2179   :  { %1778 = vrot.lane.b32.xlu0 %v1767_v37, %s2756_s6  ;;  %v1770_v40 = vadd.f32 %v1767_v37, %v1694_v39 }
0x217b   :  { %v2146_v41 = vmul.f32 -1.442695, %v1770_v40 }
0x217d   :  { %2684 = vpow2.f32 %v2146_v41 }
0x2187   :  { %v2685_v42 = vpop.eup %2684 }
0x2188   :  { %v1774_v43 = vadd.f32 1.0, %v2685_v42 }
0x218a   :  { %2686 = vrcp.f32 %v1774_v43 }
0x2194   :  { %v2687_v19 = vpop.eup %2686 }
0x2195   :  { %v1788_v48 = vsub.f32 1.0, %v2687_v19  ;;  %v1794_v50 = vmul.f32 %v2687_v19, %v1693_v35 }
0x21eb   :  { %v1779_v44 = vpop.permute.xlu0 %1778 }
0x21ec   :  { %v1781_v45 = vmul.f32 %v2687_v19, %v1779_v44 }
0x21ee   :  { %1783 = vrot.lane.b32.xlu1 %v1781_v45, %s2756_s6 }
0x2260   :  { %v1784_v46 = vpop.permute.xlu1 %1783 }
0x2261   :  { %v1786_v22 = vadd.f32 %v1784_v46, %v1694_v39  ;;  %v2151_v39 = vld [vmem:[%s3121_s2 + $0x20] ss:$0 sm:$0xff] }
0x2263   :  { %2688 = vtanh.f32 %v1786_v22 }
0x226d   :  { %v2689_v47 = vpop.eup %2688 }
0x226e   :  { %1790 = vrot.lane.b32.xlu0 %v2689_v47, %s2757_s7 }
0x22e0   :  { %v1791_v49 = vpop.permute.xlu0 %1790 }
0x22e1   :  { %v1793_v51 = vmul.f32 %v1791_v49, %v1788_v48 }
0x22e3   :  { %v1795_v53 = vadd.f32 %v1794_v50, %v1793_v51 }
0x22e5   :  { %1798 = vrot.lane.b32.xlu1 %v1795_v53, %s2757_s7 }
0x2357   :  { %v1799_v54 = vpop.permute.xlu1 %1798 }
0x2358   :  { %2459 = vmatmul.mubr.msk.f32.vlgmr.msra.gmra.mrb[26].mxu0 %vm193_vm3, %v1799_v54 }
0x2359   :  { %2480 = vmatprep.mubr.msk.f32.mxu0 %vm2754_vm0, %v2755_v1 }
0x242b   :  { %v1868_v55 = vpop.f32.mrb[26].mxu0 }
0x242c   :  { %v1869_v56 = vadd.f32 %v3008_v30, %v1868_v55  ;;  %v2460_v57 = vpop.f32.mrb[27].mxu0 }
0x242e   :  { %1880 = vrot.lane.b32.xlu0 %v1869_v56, %s2756_s6  ;;  %v1872_v59 = vadd.f32 %v1869_v56, %v1796_v58 }
0x2430   :  { %v2148_v18 = vmul.f32 -1.442695, %v1872_v59 }
0x2432   :  { %2690 = vpow2.f32 %v2148_v18 }
0x243c   :  { %v2691_v60 = vpop.eup %2690 }
0x243d   :  { %v1876_v61 = vadd.f32 1.0, %v2691_v60 }
0x243f   :  { %2692 = vrcp.f32 %v1876_v61 }
0x2449   :  { %v2693_v62 = vpop.eup %2692 }
0x244a   :  { %v1890_v5 = vsub.f32 1.0, %v2693_v62  ;;  %v1896_v7 = vmul.f32 %v2693_v62, %v1795_v53 }
0x24a0   :  { %v1881_v63 = vpop.permute.xlu0 %1880 }
0x24a1   :  { %v1883_v2 = vmul.f32 %v2693_v62, %v1881_v63 }
0x24a3   :  { %1885 = vrot.lane.b32.xlu1 %v1883_v2, %s2756_s6 }
0x2515   :  { %v1886_v3 = vpop.permute.xlu1 %1885 }
0x2516   :  { %v1888_v1 = vadd.f32 %v1886_v3, %v1796_v58 }
0x2518   :  { %2694 = vtanh.f32 %v1888_v1 }
0x2522   :  { %v2695_v4 = vpop.eup %2694 }
0x2523   :  { %1892 = vrot.lane.b32.xlu0 %v2695_v4, %s2757_s7 }
0x2595   :  { %v1893_v6 = vpop.permute.xlu0 %1892 }
0x2596   :  { %v1895_v9 = vmul.f32 %v1893_v6, %v1890_v5 }
0x2598   :  { %v1897_v10 = vadd.f32 %v1896_v7, %v1895_v9 }
0x259a   :  { %1900 = vrot.lane.b32.xlu1 %v1897_v10, %s2757_s7 }
0x260c   :  { %v1901_v11 = vpop.permute.xlu1 %1900 }
0x260d   :  { %2470 = vmatmul.mubr.msk.f32.vlgmr.msra.gmra.mrb[18].mxu1 %vm193_vm3, %v1901_v11 }
0x26e0   :  { %v1970_v14 = vpop.f32.mrb[18].mxu1 }
0x26e1   :  { %v1971_v15 = vadd.f32 %v3008_v30, %v1970_v14  ;;  %v2471_v16 = vpop.f32.mrb[19].mxu1  ;;  %v2001_v30 = vld [vmem:[#allocation4 + $0x78] sm:$0xff] }
0x26e2   :  { %v2592_v29 = vpack.c.bf16 %v2001_v30, %v2000_v28 }
0x26e3   :  { %1982 = vrot.lane.b32.xlu0 %v1971_v15, %s2756_s6  ;;  %v1974_v13 = vadd.f32 %v1971_v15, %v1898_v17 }
0x26e4   :  { %2593 = vmatpush3.bf16.msra.mxu0 %v2592_v29 }
0x26e5   :  { %v2150_v20 = vmul.f32 -1.442695, %v1974_v13  ;;  %2594 = vmatprep.subr.bf16.mxu0 %v2753_v0 }
0x26e7   :  { %2696 = vpow2.f32 %v2150_v20 }
0x26e8   :  { %2596 = vmatpush3.bf16.msra.mxu0 %v2595_v32 }
0x26f1   :  { %v2697_v21 = vpop.eup %2696 }
0x26f2   :  { %v1978_v23 = vadd.f32 1.0, %v2697_v21 }
0x26f4   :  { %2698 = vrcp.f32 %v1978_v23 }
0x26fe   :  { %v2699_v24 = vpop.eup %2698 }
0x26ff   :  { %v1992_v34 = vsub.f32 1.0, %v2699_v24  ;;  %v1998_v52 = vmul.f32 %v2699_v24, %v1897_v10 }
0x2755   :  { %v1983_v8 = vpop.permute.xlu0 %1982 }
0x2756   :  { %v1985_v25 = vmul.f32 %v2699_v24, %v1983_v8 }
0x2758   :  { %1987 = vrot.lane.b32.xlu1 %v1985_v25, %s2756_s6 }
0x27ca   :  { %v1988_v26 = vpop.permute.xlu1 %1987 }
0x27cb   :  { %v1990_v27 = vadd.f32 %v1988_v26, %v1898_v17 }
0x27cd   :  { %2700 = vtanh.f32 %v1990_v27 }
0x27d7   :  { %v2701_v33 = vpop.eup %2700 }
0x27d8   :  { %1994 = vrot.lane.b32.xlu0 %v2701_v33, %s2757_s7 }
0x284a   :  { %v1995_v35 = vpop.permute.xlu0 %1994 }
0x284b   :  { %v1997_v36 = vmul.f32 %v1995_v35, %v1992_v34 }
0x284d   :  { %v1999_v37 = vadd.f32 %v1998_v52, %v1997_v36 }
0x284f   :  { %2010 = vrot.lane.b32.xlu1 %v1999_v37, %s2757_s7 }
0x28c1   :  { %v2011_v38 = vpop.permute.xlu1 %2010 }
0x28c2   :  { %2481 = vmatmul.mubr.msk.f32.vlgmr.msra.gmra.mrb[28].mxu0 %vm193_vm3, %v2011_v38 }
0x2995   :  { %v2080_v0 = vpop.f32.mrb[28].mxu0 }
0x2996   :  { %v2081_v40 = vadd.f32 %v2151_v39, %v2080_v0  ;;  %v2482_v41 = vpop.f32.mrb[29].mxu0 }
0x2998   :  { %2085 = vst.msk [vmem:[#allocation7] sm:$0xff] %vm2084_vm4, %v2081_v40 }
0x2999   :  { %2735 = shalt.err (!%p2732_p12)
}
0x299a   :  { %s2736_s29 = scalar_lea.hbm %s3122_s3, 128 }
0x299b   :  { %p2737_p13 = scmp.ne.s32.totalorder %s3122_s3, %s2736_s29  ;;  %p2740_p0 = scmp.lt.u32.totalorder %s2736_s29, %s3122_s3 }
0x299d   :  { %p2742_p1 = pnand %p2740_p0, %p2737_p13 }
0x299f   :  { %2745 = shalt.err (!%p2742_p1)
}
0x29a0   :  { %2095 = dma.vmem_to_hbm [thread:$0]  %s2093_s26, 128, %s3122_s3, [#allocation6]  }
0x29a1   :  { %2748 = dma.done.wait [#allocation6], 128  }
0x29a2   :  { %2749 = vsyncadd [#allocation6], 4294967168 }
0x29a3   :  { %2099 = vsyncpa [#allocation5], 1 }
0x29a4   :  { %2100 = vsyncpa [#allocation6], 1 }

</bundles_post_ra>
